<compile_context>
chip_gen: v7x
topology: tpu7x:2x2x1
jax: 0.10.0
libtpu: 0.0.40
codegen_flags: <defaults>
</compile_context>

<pallas_src>
import math
import functools

import jax
import jax.numpy as jnp
from jax.experimental import pallas as pl
from jax.experimental.pallas import tpu as pltpu

LN_EPS = 1e-5
GELU_C = math.sqrt(2.0 / math.pi)
MASK_NEG = -1e30  # finite "minus infinity" for causal masking


# ----------------------------- in-kernel math -------------------------------

def _layer_norm(x, w):
    mu = jnp.mean(x, axis=-1, keepdims=True)
    xc = x - mu
    var = jnp.mean(xc * xc, axis=-1, keepdims=True)
    return xc * jax.lax.rsqrt(var + LN_EPS) * w


def _gelu(x):
    return 0.5 * x * (1.0 + jnp.tanh(GELU_C * (x + 0.044715 * x * x * x)))


def _round_up(x, m):
    return ((x + m - 1) // m) * m


def _vmem_limit_bytes():
    # Raise the scoped-VMEM limit above the 32 MiB default (v5e/v6e have
    # 128 MiB physical) while staying under v7x's 64 MiB per-core VMEM.
    try:
        cap = int(pltpu.get_tpu_info().vmem_capacity_bytes)
    except Exception:
        cap = 64 * 1024 * 1024
    return int(min(max(cap * 3 // 4, 32 * 1024 * 1024), 112 * 1024 * 1024))


# ------------------ fused transformer-stack kernel (grid = (L,)) -------------

def _gpt_blocks_kernel(n_head, x_ref, ln1w_ref, wattn_ref, wproj_ref,
                       ln2w_ref, wfc_ref, wproj2_ref, lnfw_ref,
                       h_last_ref, res_ref):
    layer = pl.program_id(0)
    n_layer = pl.num_programs(0)
    bf16 = jnp.bfloat16

    # Residual stream lives in a VMEM scratch that persists across all L grid
    # iterations (never written back to HBM).
    @pl.when(layer == 0)
    def _():
        res_ref[...] = x_ref[...]

    x = res_ref[...]                              # (B, T, C) f32
    B, T, C = x.shape
    H = n_head
    hd = C // H
    scale = 1.0 / math.sqrt(hd)

    # ---- causal self-attention ----
    h = _layer_norm(x, ln1w_ref[0, 0]).reshape(B * T, C)
    qkv = jnp.dot(h.astype(bf16), wattn_ref[0],
                  preferred_element_type=jnp.float32)                  # (B*T, 3C)
    # Scale folded into q (B*T*C elems) rather than the (B*H,T,T) scores.
    q = (qkv[:, 0:C] * scale).reshape(B, T, H, hd) \
        .transpose(0, 2, 1, 3).reshape(B * H, T, hd)
    k = qkv[:, C:2 * C].reshape(B, T, H, hd) \
        .transpose(0, 2, 1, 3).reshape(B * H, T, hd)
    v = qkv[:, 2 * C:3 * C].reshape(B, T, H, hd) \
        .transpose(0, 2, 1, 3).reshape(B * H, T, hd)

    s = jnp.einsum("ztd,zsd->zts", q.astype(bf16), k.astype(bf16),
                   preferred_element_type=jnp.float32)                 # (B*H, T, T)
    row = jax.lax.broadcasted_iota(jnp.int32, (T, T), 0)
    col = jax.lax.broadcasted_iota(jnp.int32, (T, T), 1)
    s = jnp.where((row >= col)[None], s, jnp.float32(MASK_NEG))
    p = jnp.exp(s - jnp.max(s, axis=-1, keepdims=True))                # unnormalized
    denom = jnp.sum(p, axis=-1, keepdims=True)                         # (B*H, T, 1)

    y = jnp.einsum("zts,zsd->ztd", p.astype(bf16), v.astype(bf16),
                   preferred_element_type=jnp.float32)                 # (B*H, T, hd)
    # Normalize AFTER the PV matmul: divide T*hd elems, reciprocal on the EUP.
    y = y * pl.reciprocal(denom, approx=True)
    # Cast before the head->channel relayout (half the bytes moved).
    y = y.astype(bf16).reshape(B, H, T, hd).transpose(0, 2, 1, 3).reshape(B * T, C)
    att = jnp.dot(y, wproj_ref[0], preferred_element_type=jnp.float32)  # (B*T, C)
    x = x + att.reshape(B, T, C)

    # ---- MLP ----
    h2 = _layer_norm(x, ln2w_ref[0, 0]).reshape(B * T, C)
    f = _gelu(jnp.dot(h2.astype(bf16), wfc_ref[0],
                      preferred_element_type=jnp.float32))             # (B*T, 4C)
    m = jnp.dot(f.astype(bf16), wproj2_ref[0],
                preferred_element_type=jnp.float32)                    # (B*T, C)
    x = x + m.reshape(B, T, C)
    res_ref[...] = x

    # Epilogue: ln_f applied exactly once, only to the last token of each batch
    # row (inference / targets=None path of the reference model).
    @pl.when(layer == n_layer - 1)
    def _():
        h_last_ref[...] = _layer_norm(x[:, T - 1:T, :], lnfw_ref[0])   # (B, 1, C)


def gpt_blocks(x, params, n_head):
    B, T, C = x.shape
    L = params["w_attn"].shape[0]
    BT = B * T
    kernel = functools.partial(_gpt_blocks_kernel, n_head)
    const3 = lambda l: (0, 0, 0)
    wmap3 = lambda l: (l, 0, 0)
    const2 = lambda l: (0, 0)

    ce = pl.CostEstimate(
        flops=L * (24 * BT * C * C + 4 * B * T * T * C),
        transcendentals=L * (B * n_head * T * T + 4 * BT * C),
        # bf16 weights fetched once per layer + f32 LN weights + f32 x read +
        # f32 ln_f weight + f32 (B,1,C) output.
        bytes_accessed=L * (24 * C * C + 8 * C) + 4 * BT * C + 4 * C + 4 * B * C,
    )
    return pl.pallas_call(
        kernel,
        out_shape=jax.ShapeDtypeStruct((B, 1, C), jnp.float32),
        grid=(L,),
        in_specs=[
            pl.BlockSpec((B, T, C), const3),          # token+pos embeddings (f32)
            pl.BlockSpec((1, 1, C), wmap3),           # ln1 weight  (f32)
            pl.BlockSpec((1, C, 3 * C), wmap3),       # w_attn      (bf16)
            pl.BlockSpec((1, C, C), wmap3),           # w_attn_proj (bf16)
            pl.BlockSpec((1, 1, C), wmap3),           # ln2 weight  (f32)
            pl.BlockSpec((1, C, 4 * C), wmap3),       # w_fc        (bf16)
            pl.BlockSpec((1, 4 * C, C), wmap3),       # w_mlp_proj  (bf16)
            pl.BlockSpec((1, C), const2),             # ln_f weight (f32)
        ],
        out_specs=pl.BlockSpec((B, 1, C), const3),
        scratch_shapes=[pltpu.VMEM((B, T, C), jnp.float32)],   # residual stream
        compiler_params=pltpu.CompilerParams(
            dimension_semantics=("arbitrary",),
            vmem_limit_bytes=_vmem_limit_bytes()),
        cost_estimate=ce,
    )(x, params["ln1_w"], params["w_attn"], params["w_attn_proj"],
      params["ln2_w"], params["w_fc"], params["w_mlp_proj"], params["lnf_w"])


# ------------------------- lm_head (vocab-tiled GEMM) ------------------------

def _head_kernel(h_ref, wlm_ref, o_ref):
    o_ref[...] = jnp.dot(h_ref[...].astype(jnp.bfloat16), wlm_ref[...],
                         preferred_element_type=jnp.float32)


def _vocab_tile(vp):
    for tv in (2048, 1024, 512, 256, 128):
        if vp % tv == 0:
            return tv
    return 128  # unreachable: vp is always a multiple of 128


def lm_head_last(h_last, w_lm_padded):
    """h_last: (B, C) already ln_f-normalized.  w_lm_padded: (C, Vp) bf16."""
    B, C = h_last.shape
    Vp = w_lm_padded.shape[1]
    tv = _vocab_tile(Vp)
    ce = pl.CostEstimate(flops=2 * B * C * Vp, transcendentals=0,
                         bytes_accessed=2 * C * Vp + 4 * B * C + 4 * B * Vp)
    return pl.pallas_call(
        _head_kernel,
        out_shape=jax.ShapeDtypeStruct((B, Vp), jnp.float32),
        grid=(Vp // tv,),
        in_specs=[
            pl.BlockSpec((B, C), lambda j: (0, 0)),    # normalized last tokens
            pl.BlockSpec((C, tv), lambda j: (0, j)),   # vocab tile of lm weight
        ],
        out_specs=pl.BlockSpec((B, tv), lambda j: (0, j)),
        compiler_params=pltpu.CompilerParams(
            dimension_semantics=("parallel",),
            vmem_limit_bytes=_vmem_limit_bytes()),
        cost_estimate=ce,
    )(h_last, w_lm_padded)


# ------------------------------- GPT wrapper ---------------------------------

def init_params(key, *, vocab_size, block_size, n_layer, n_embed):
    C, L, std = n_embed, n_layer, 0.02
    Vp = _round_up(vocab_size, 128)            # lane-dense padded vocab
    kit = iter(jax.random.split(key, 3 + 4 * L))
    nrm = lambda k, s: jax.random.normal(k, s, jnp.float32) * std
    wte = nrm(next(kit), (vocab_size, C))
    wpe = nrm(next(kit), (block_size, C))
    w_lm = nrm(next(kit), (C, vocab_size))
    w_lm_padded = jnp.zeros((C, Vp), jnp.float32).at[:, :vocab_size].set(w_lm)
    w_attn = jnp.stack([nrm(next(kit), (C, 3 * C)) for _ in range(L)])
    w_attn_proj = jnp.stack([nrm(next(kit), (C, C)) for _ in range(L)])
    w_fc = jnp.stack([nrm(next(kit), (C, 4 * C)) for _ in range(L)])
    w_mlp_proj = jnp.stack([nrm(next(kit), (4 * C, C)) for _ in range(L)])
    return {
        "wte": wte, "wpe": wpe,
        "lnf_w": jnp.ones((1, C), jnp.float32),
        "ln1_w": jnp.ones((L, 1, C), jnp.float32),
        "ln2_w": jnp.ones((L, 1, C), jnp.float32),
        # matmul weights stored bf16 (MXU fast path, half HBM/VMEM bytes)
        "w_lm": w_lm_padded.astype(jnp.bfloat16),
        "w_attn": w_attn.astype(jnp.bfloat16),
        "w_attn_proj": w_attn_proj.astype(jnp.bfloat16),
        "w_fc": w_fc.astype(jnp.bfloat16),
        "w_mlp_proj": w_mlp_proj.astype(jnp.bfloat16),
    }


def gpt_forward(params, idx, n_head, vocab_size):
    B, T = idx.shape
    # embedding gather + positional add kept as JAX glue
    x = jnp.take(params["wte"], idx, axis=0) + params["wpe"][:T][None]   # (B,T,C)
    h_last = gpt_blocks(x, params, n_head)                               # (B,1,C)
    logits = lm_head_last(h_last[:, 0, :], params["w_lm"])               # (B,Vp)
    return logits[:, None, :vocab_size]                                  # (B,1,V)


# ------------------------------ pure-JAX reference ---------------------------

def _ref_block(x, ln1_w, w_attn, w_attn_proj, ln2_w, w_fc, w_mlp_proj, n_head):
    B, T, C = x.shape
    hd = C // n_head
    h = _layer_norm(x, ln1_w)
    qkv = h @ w_attn
    q, k, v = jnp.split(qkv, 3, axis=-1)
    q = q.reshape(B, T, n_head, hd).transpose(0, 2, 1, 3)
    k = k.reshape(B, T, n_head, hd).transpose(0, 2, 1, 3)
    v = v.reshape(B, T, n_head, hd).transpose(0, 2, 1, 3)
    att = jnp.einsum("bhtd,bhsd->bhts", q, k) / math.sqrt(hd)
    mask = jnp.tril(jnp.ones((T, T), bool))
    att = jnp.where(mask, att, -jnp.inf)
    att = jax.nn.softmax(att, axis=-1)
    y = jnp.einsum("bhts,bhsd->bhtd", att, v).transpose(0, 2, 1, 3).reshape(B, T, C)
    x = x + y @ w_attn_proj
    h2 = _layer_norm(x, ln2_w)
    x = x + _gelu(h2 @ w_fc) @ w_mlp_proj
    return x


def _ref_forward(params, idx, n_head, vocab_size):
    f32 = jnp.float32
    B, T = idx.shape
    x = jnp.take(params["wte"], idx, axis=0) + params["wpe"][:T][None]
    L = params["w_attn"].shape[0]
    for l in range(L):
        x = _ref_block(
            x,
            params["ln1_w"][l, 0],
            params["w_attn"][l].astype(f32),
            params["w_attn_proj"][l].astype(f32),
            params["ln2_w"][l, 0],
            params["w_fc"][l].astype(f32),
            params["w_mlp_proj"][l].astype(f32),
            n_head)
    h = _layer_norm(x[:, -1:, :], params["lnf_w"][0])
    return h @ params["w_lm"].astype(f32)[:, :vocab_size]           # (B, 1, V)


# ----------------------------------- main ------------------------------------

if __name__ == "__main__":
    vocab_size, block_size, n_layer, n_head, n_embed = 65, 32, 4, 4, 64
    B, T = 2, 8

    key = jax.random.PRNGKey(0)
    k_param, k_idx = jax.random.split(key)
    params = init_params(k_param, vocab_size=vocab_size, block_size=block_size,
                         n_layer=n_layer, n_embed=n_embed)
    idx = jax.random.randint(k_idx, (B, T), 0, vocab_size, dtype=jnp.int32)

    logits = jax.block_until_ready(gpt_forward(params, idx, n_head, vocab_size))
    assert logits.shape == (B, 1, vocab_size), logits.shape

    ref = jax.block_until_ready(_ref_forward(params, idx, n_head, vocab_size))
    max_err = float(jnp.max(jnp.abs(logits - ref)))
    # kernel runs bf16 matmul operands with f32 accumulation -> small tolerance
    assert max_err < 3e-2, max_err

    print("KERNEL_OK")
</pallas_src>

<mosaic_0001>
module attributes {stable_mosaic.version = 11 : i64} {
  func.func @_gpt_blocks_kernel(%arg0: i32, %arg1: memref<2x8x64xf32, #tpu.memory_space<vmem>>, %arg2: memref<1x1x64xf32, #tpu.memory_space<vmem>>, %arg3: memref<1x64x192xbf16, #tpu.memory_space<vmem>>, %arg4: memref<1x64x64xbf16, #tpu.memory_space<vmem>>, %arg5: memref<1x1x64xf32, #tpu.memory_space<vmem>>, %arg6: memref<1x64x256xbf16, #tpu.memory_space<vmem>>, %arg7: memref<1x256x64xbf16, #tpu.memory_space<vmem>>, %arg8: memref<1x64xf32, #tpu.memory_space<vmem>>, %arg9: memref<2x1x64xf32, #tpu.memory_space<vmem>>, %arg10: memref<2x8x64xf32, #tpu.memory_space<vmem>>) attributes {dimension_semantics = [#tpu.dimension_semantics<arbitrary>], iteration_bounds = array<i64: 4>, scalar_prefetch = 0 : i64, scratch_operands = 1 : i64, tpu.core_type = #tpu.core_type<tc>, window_params = [{pipeline_mode = #tpu.pipeline_mode<synchronous>, transform_indices = @transform_0, window_bounds = array<i64: 2, 8, 64>}, {transform_indices = @transform_1, window_bounds = array<i64: 1, 1, 64>}, {transform_indices = @transform_2, window_bounds = array<i64: 1, 64, 192>}, {transform_indices = @transform_3, window_bounds = array<i64: 1, 64, 64>}, {transform_indices = @transform_4, window_bounds = array<i64: 1, 1, 64>}, {transform_indices = @transform_5, window_bounds = array<i64: 1, 64, 256>}, {transform_indices = @transform_6, window_bounds = array<i64: 1, 256, 64>}, {pipeline_mode = #tpu.pipeline_mode<synchronous>, transform_indices = @transform_7, window_bounds = array<i64: 1, 64>}, {pipeline_mode = #tpu.pipeline_mode<synchronous>, transform_indices = @transform_8, window_bounds = array<i64: 2, 1, 64>}]} {
    %c0_i32 = arith.constant 0 : i32
    %0 = arith.cmpi eq, %arg0, %c0_i32 : i32
    %1 = arith.extui %0 : i1 to i32
    %c0_i32_0 = arith.constant 0 : i32
    %2 = arith.cmpi ne, %1, %c0_i32_0 : i32
    scf.if %2 {
      %c0_48 = arith.constant 0 : index
      %c0_49 = arith.constant 0 : index
      %c0_50 = arith.constant 0 : index
      %126 = vector.load %arg1[%c0_48, %c0_49, %c0_50] : memref<2x8x64xf32, #tpu.memory_space<vmem>>, vector<2x8x64xf32>
      %c0_51 = arith.constant 0 : index
      %c0_52 = arith.constant 0 : index
      %c0_53 = arith.constant 0 : index
      %127 = vector.load %arg10[%c0_51, %c0_52, %c0_53] : memref<2x8x64xf32, #tpu.memory_space<vmem>>, vector<2x8x64xf32>
      tpu.vector_store %arg10[%c0_51, %c0_52, %c0_53], %126 {strides = array<i32>} : memref<2x8x64xf32, #tpu.memory_space<vmem>>, vector<2x8x64xf32>,
    } else {
    }
    %c0 = arith.constant 0 : index
    %c0_1 = arith.constant 0 : index
    %c0_2 = arith.constant 0 : index
    %3 = vector.load %arg10[%c0, %c0_1, %c0_2] : memref<2x8x64xf32, #tpu.memory_space<vmem>>, vector<2x8x64xf32>
    %c0_3 = arith.constant 0 : index
    %c0_4 = arith.constant 0 : index
    %c0_5 = arith.constant 0 : index
    %4 = vector.load %arg2[%c0_3, %c0_4, %c0_5] : memref<1x1x64xf32, #tpu.memory_space<vmem>>, vector<1x1x64xf32>
    %5 = vector.shape_cast %4 : vector<1x1x64xf32> to vector<64xf32>
    %cst = arith.constant dense<0.000000e+00> : vector<2x8xf32>
    %6 = vector.multi_reduction <add>, %3, %cst [2] : vector<2x8x64xf32> to vector<2x8xf32>
    %7 = vector.shape_cast %6 : vector<2x8xf32> to vector<2x8x1xf32>
    %cst_6 = arith.constant 6.400000e+01 : f32
    %8 = vector.broadcast %cst_6 : f32 to vector<2x8x1xf32>
    %9 = arith.divf %7, %8 : vector<2x8x1xf32>
    %10 = vector.broadcast %9 : vector<2x8x1xf32> to vector<2x8x64xf32>
    %11 = arith.subf %3, %10 : vector<2x8x64xf32>
    %12 = arith.mulf %11, %11 : vector<2x8x64xf32>
    %cst_7 = arith.constant dense<0.000000e+00> : vector<2x8xf32>
    %13 = vector.multi_reduction <add>, %12, %cst_7 [2] : vector<2x8x64xf32> to vector<2x8xf32>
    %14 = vector.shape_cast %13 : vector<2x8xf32> to vector<2x8x1xf32>
    %cst_8 = arith.constant 6.400000e+01 : f32
    %15 = vector.broadcast %cst_8 : f32 to vector<2x8x1xf32>
    %16 = arith.divf %14, %15 : vector<2x8x1xf32>
    %cst_9 = arith.constant 9.99999974E-6 : f32
    %17 = vector.broadcast %cst_9 : f32 to vector<2x8x1xf32>
    %18 = arith.addf %16, %17 : vector<2x8x1xf32>
    %19 = math.rsqrt %18 : vector<2x8x1xf32>
    %20 = vector.broadcast %19 : vector<2x8x1xf32> to vector<2x8x64xf32>
    %21 = arith.mulf %11, %20 : vector<2x8x64xf32>
    %22 = vector.shape_cast %5 : vector<64xf32> to vector<1x1x64xf32>
    %23 = vector.broadcast %22 : vector<1x1x64xf32> to vector<2x8x64xf32>
    %24 = arith.mulf %21, %23 : vector<2x8x64xf32>
    %25 = vector.shape_cast %24 : vector<2x8x64xf32> to vector<16x64xf32>
    %26 = arith.truncf %25 : vector<16x64xf32> to vector<16x64xbf16>
    %c0_10 = arith.constant 0 : index
    %c0_11 = arith.constant 0 : index
    %c0_12 = arith.constant 0 : index
    %27 = vector.load %arg3[%c0_10, %c0_11, %c0_12] : memref<1x64x192xbf16, #tpu.memory_space<vmem>>, vector<1x64x192xbf16>
    %28 = vector.shape_cast %27 : vector<1x64x192xbf16> to vector<64x192xbf16>
    %cst_13 = arith.constant dense<0.000000e+00> : vector<16x192xf32>
    %29 = tpu.matmul %26, %28, %cst_13 {dimension_numbers = #tpu.dot_dimension_numbers<[1], [0], [0], [1], [0, 0, 1, 1], [], []>} : vector<16x64xbf16>, vector<64x192xbf16>, vector<16x192xf32> -> vector<16x192xf32>
    %30 = vector.extract_strided_slice %29 {offsets = [0, 0], sizes = [16, 64], strides = [1, 1]} : vector<16x192xf32> to vector<16x64xf32>
    %cst_14 = arith.constant 2.500000e-01 : f32
    %31 = vector.broadcast %cst_14 : f32 to vector<16x64xf32>
    %32 = arith.mulf %30, %31 : vector<16x64xf32>
    %33 = vector.shape_cast %32 : vector<16x64xf32> to vector<2x8x4x16xf32>
    %34 = tpu.transpose %33, [0, 2, 1, 3] : vector<2x8x4x16xf32> -> vector<2x4x8x16xf32>
    %35 = vector.shape_cast %34 : vector<2x4x8x16xf32> to vector<8x8x16xf32>
    %36 = vector.extract_strided_slice %29 {offsets = [0, 64], sizes = [16, 64], strides = [1, 1]} : vector<16x192xf32> to vector<16x64xf32>
    %37 = vector.shape_cast %36 : vector<16x64xf32> to vector<2x8x4x16xf32>
    %38 = tpu.transpose %37, [0, 2, 1, 3] : vector<2x8x4x16xf32> -> vector<2x4x8x16xf32>
    %39 = vector.shape_cast %38 : vector<2x4x8x16xf32> to vector<8x8x16xf32>
    %40 = vector.extract_strided_slice %29 {offsets = [0, 128], sizes = [16, 64], strides = [1, 1]} : vector<16x192xf32> to vector<16x64xf32>
    %41 = vector.shape_cast %40 : vector<16x64xf32> to vector<2x8x4x16xf32>
    %42 = tpu.transpose %41, [0, 2, 1, 3] : vector<2x8x4x16xf32> -> vector<2x4x8x16xf32>
    %43 = vector.shape_cast %42 : vector<2x4x8x16xf32> to vector<8x8x16xf32>
    %44 = arith.truncf %35 : vector<8x8x16xf32> to vector<8x8x16xbf16>
    %45 = arith.truncf %39 : vector<8x8x16xf32> to vector<8x8x16xbf16>
    "tpu.trace_start"() <{level = 10 : i32, message = "ztd,zsd->zts"}> : () -> ()
    %cst_15 = arith.constant dense<0.000000e+00> : vector<8x8x8xf32>
    %46 = tpu.matmul %44, %45, %cst_15 {dimension_numbers = #tpu.dot_dimension_numbers<[2], [2], [1], [1], [0, 0, 0, 1, 1, 1], [0], [0]>} : vector<8x8x16xbf16>, vector<8x8x16xbf16>, vector<8x8x8xf32> -> vector<8x8x8xf32>
    "tpu.trace_stop"() : () -> ()
    %47 = tpu.iota {dimensions = array<i32: 0>} : vector<8x8xi32>
    %48 = tpu.iota {dimensions = array<i32: 1>} : vector<8x8xi32>
    %49 = arith.cmpi sge, %47, %48 : vector<8x8xi32>
    %50 = vector.shape_cast %49 : vector<8x8xi1> to vector<1x8x8xi1>
    %cst_16 = arith.constant -1.000000e+30 : f32
    %51 = vector.shape_cast %50 : vector<1x8x8xi1> to vector<1x8x8xi1>
    %52 = vector.broadcast %51 : vector<1x8x8xi1> to vector<8x8x8xi1>
    %53 = vector.broadcast %cst_16 : f32 to vector<8x8x8xf32>
    %54 = arith.select %52, %46, %53 : vector<8x8x8xi1>, vector<8x8x8xf32>
    %cst_17 = arith.constant dense<0xFF800000> : vector<8x8xf32>
    %55 = vector.multi_reduction <maximumf>, %54, %cst_17 [2] : vector<8x8x8xf32> to vector<8x8xf32>
    %56 = vector.shape_cast %55 : vector<8x8xf32> to vector<8x8x1xf32>
    %57 = vector.broadcast %56 : vector<8x8x1xf32> to vector<8x8x8xf32>
    %58 = arith.subf %54, %57 : vector<8x8x8xf32>
    %59 = math.exp %58 : vector<8x8x8xf32>
    %cst_18 = arith.constant dense<0.000000e+00> : vector<8x8xf32>
    %60 = vector.multi_reduction <add>, %59, %cst_18 [2] : vector<8x8x8xf32> to vector<8x8xf32>
    %61 = vector.shape_cast %60 : vector<8x8xf32> to vector<8x8x1xf32>
    %62 = arith.truncf %59 : vector<8x8x8xf32> to vector<8x8x8xbf16>
    %63 = arith.truncf %43 : vector<8x8x16xf32> to vector<8x8x16xbf16>
    "tpu.trace_start"() <{level = 10 : i32, message = "zts,zsd->ztd"}> : () -> ()
    %cst_19 = arith.constant dense<0.000000e+00> : vector<8x8x16xf32>
    %64 = tpu.matmul %62, %63, %cst_19 {dimension_numbers = #tpu.dot_dimension_numbers<[2], [1], [1], [2], [0, 0, 0, 1, 1, 2], [0], [0]>} : vector<8x8x8xbf16>, vector<8x8x16xbf16>, vector<8x8x16xf32> -> vector<8x8x16xf32>
    "tpu.trace_stop"() : () -> ()
    %65 = tpu.reciprocal %61 {approx = true} : vector<8x8x1xf32> -> vector<8x8x1xf32>
    %66 = vector.broadcast %65 : vector<8x8x1xf32> to vector<8x8x16xf32>
    %67 = arith.mulf %64, %66 : vector<8x8x16xf32>
    %68 = arith.truncf %67 : vector<8x8x16xf32> to vector<8x8x16xbf16>
    %69 = vector.shape_cast %68 : vector<8x8x16xbf16> to vector<2x4x8x16xbf16>
    %70 = tpu.transpose %69, [0, 2, 1, 3] : vector<2x4x8x16xbf16> -> vector<2x8x4x16xbf16>
    %71 = vector.shape_cast %70 : vector<2x8x4x16xbf16> to vector<16x64xbf16>
    %c0_20 = arith.constant 0 : index
    %c0_21 = arith.constant 0 : index
    %c0_22 = arith.constant 0 : index
    %72 = vector.load %arg4[%c0_20, %c0_21, %c0_22] : memref<1x64x64xbf16, #tpu.memory_space<vmem>>, vector<1x64x64xbf16>
    %73 = vector.shape_cast %72 : vector<1x64x64xbf16> to vector<64x64xbf16>
    %cst_23 = arith.constant dense<0.000000e+00> : vector<16x64xf32>
    %74 = tpu.matmul %71, %73, %cst_23 {dimension_numbers = #tpu.dot_dimension_numbers<[1], [0], [0], [1], [0, 0, 1, 1], [], []>} : vector<16x64xbf16>, vector<64x64xbf16>, vector<16x64xf32> -> vector<16x64xf32>
    %75 = vector.shape_cast %74 : vector<16x64xf32> to vector<2x8x64xf32>
    %76 = arith.addf %3, %75 : vector<2x8x64xf32>
    %c0_24 = arith.constant 0 : index
    %c0_25 = arith.constant 0 : index
    %c0_26 = arith.constant 0 : index
    %77 = vector.load %arg5[%c0_24, %c0_25, %c0_26] : memref<1x1x64xf32, #tpu.memory_space<vmem>>, vector<1x1x64xf32>
    %78 = vector.shape_cast %77 : vector<1x1x64xf32> to vector<64xf32>
    %cst_27 = arith.constant dense<0.000000e+00> : vector<2x8xf32>
    %79 = vector.multi_reduction <add>, %76, %cst_27 [2] : vector<2x8x64xf32> to vector<2x8xf32>
    %80 = vector.shape_cast %79 : vector<2x8xf32> to vector<2x8x1xf32>
    %cst_28 = arith.constant 6.400000e+01 : f32
    %81 = vector.broadcast %cst_28 : f32 to vector<2x8x1xf32>
    %82 = arith.divf %80, %81 : vector<2x8x1xf32>
    %83 = vector.broadcast %82 : vector<2x8x1xf32> to vector<2x8x64xf32>
    %84 = arith.subf %76, %83 : vector<2x8x64xf32>
    %85 = arith.mulf %84, %84 : vector<2x8x64xf32>
    %cst_29 = arith.constant dense<0.000000e+00> : vector<2x8xf32>
    %86 = vector.multi_reduction <add>, %85, %cst_29 [2] : vector<2x8x64xf32> to vector<2x8xf32>
    %87 = vector.shape_cast %86 : vector<2x8xf32> to vector<2x8x1xf32>
    %cst_30 = arith.constant 6.400000e+01 : f32
    %88 = vector.broadcast %cst_30 : f32 to vector<2x8x1xf32>
    %89 = arith.divf %87, %88 : vector<2x8x1xf32>
    %cst_31 = arith.constant 9.99999974E-6 : f32
    %90 = vector.broadcast %cst_31 : f32 to vector<2x8x1xf32>
    %91 = arith.addf %89, %90 : vector<2x8x1xf32>
    %92 = math.rsqrt %91 : vector<2x8x1xf32>
    %93 = vector.broadcast %92 : vector<2x8x1xf32> to vector<2x8x64xf32>
    %94 = arith.mulf %84, %93 : vector<2x8x64xf32>
    %95 = vector.shape_cast %78 : vector<64xf32> to vector<1x1x64xf32>
    %96 = vector.broadcast %95 : vector<1x1x64xf32> to vector<2x8x64xf32>
    %97 = arith.mulf %94, %96 : vector<2x8x64xf32>
    %98 = vector.shape_cast %97 : vector<2x8x64xf32> to vector<16x64xf32>
    %99 = arith.truncf %98 : vector<16x64xf32> to vector<16x64xbf16>
    %c0_32 = arith.constant 0 : index
    %c0_33 = arith.constant 0 : index
    %c0_34 = arith.constant 0 : index
    %100 = vector.load %arg6[%c0_32, %c0_33, %c0_34] : memref<1x64x256xbf16, #tpu.memory_space<vmem>>, vector<1x64x256xbf16>
    %101 = vector.shape_cast %100 : vector<1x64x256xbf16> to vector<64x256xbf16>
    %cst_35 = arith.constant dense<0.000000e+00> : vector<16x256xf32>
    %102 = tpu.matmul %99, %101, %cst_35 {dimension_numbers = #tpu.dot_dimension_numbers<[1], [0], [0], [1], [0, 0, 1, 1], [], []>} : vector<16x64xbf16>, vector<64x256xbf16>, vector<16x256xf32> -> vector<16x256xf32>
    %cst_36 = arith.constant 5.000000e-01 : f32
    %103 = vector.broadcast %cst_36 : f32 to vector<16x256xf32>
    %104 = arith.mulf %103, %102 : vector<16x256xf32>
    %cst_37 = arith.constant 4.471500e-02 : f32
    %105 = vector.broadcast %cst_37 : f32 to vector<16x256xf32>
    %106 = arith.mulf %105, %102 : vector<16x256xf32>
    %107 = arith.mulf %106, %102 : vector<16x256xf32>
    %108 = arith.mulf %107, %102 : vector<16x256xf32>
    %109 = arith.addf %102, %108 : vector<16x256xf32>
    %cst_38 = arith.constant 0.797884583 : f32
    %110 = vector.broadcast %cst_38 : f32 to vector<16x256xf32>
    %111 = arith.mulf %110, %109 : vector<16x256xf32>
    %112 = math.tanh %111 : vector<16x256xf32>
    %cst_39 = arith.constant 1.000000e+00 : f32
    %113 = vector.broadcast %cst_39 : f32 to vector<16x256xf32>
    %114 = arith.addf %113, %112 : vector<16x256xf32>
    %115 = arith.mulf %104, %114 : vector<16x256xf32>
    %116 = arith.truncf %115 : vector<16x256xf32> to vector<16x256xbf16>
    %c0_40 = arith.constant 0 : index
    %c0_41 = arith.constant 0 : index
    %c0_42 = arith.constant 0 : index
    %117 = vector.load %arg7[%c0_40, %c0_41, %c0_42] : memref<1x256x64xbf16, #tpu.memory_space<vmem>>, vector<1x256x64xbf16>
    %118 = vector.shape_cast %117 : vector<1x256x64xbf16> to vector<256x64xbf16>
    %cst_43 = arith.constant dense<0.000000e+00> : vector<16x64xf32>
    %119 = tpu.matmul %116, %118, %cst_43 {dimension_numbers = #tpu.dot_dimension_numbers<[1], [0], [0], [1], [0, 0, 1, 1], [], []>} : vector<16x256xbf16>, vector<256x64xbf16>, vector<16x64xf32> -> vector<16x64xf32>
    %120 = vector.shape_cast %119 : vector<16x64xf32> to vector<2x8x64xf32>
    %121 = arith.addf %76, %120 : vector<2x8x64xf32>
    %c0_44 = arith.constant 0 : index
    %c0_45 = arith.constant 0 : index
    %c0_46 = arith.constant 0 : index
    %122 = vector.load %arg10[%c0_44, %c0_45, %c0_46] : memref<2x8x64xf32, #tpu.memory_space<vmem>>, vector<2x8x64xf32>
    tpu.vector_store %arg10[%c0_44, %c0_45, %c0_46], %121 {strides = array<i32>} : memref<2x8x64xf32, #tpu.memory_space<vmem>>, vector<2x8x64xf32>,
    %c3_i32 = arith.constant 3 : i32
    %123 = arith.cmpi eq, %arg0, %c3_i32 : i32
    %124 = arith.extui %123 : i1 to i32
    %c0_i32_47 = arith.constant 0 : i32
    %125 = arith.cmpi ne, %124, %c0_i32_47 : i32
    scf.if %125 {
      %126 = vector.extract_strided_slice %121 {offsets = [0, 7, 0], sizes = [2, 1, 64], strides = [1, 1, 1]} : vector<2x8x64xf32> to vector<2x1x64xf32>
      %c0_48 = arith.constant 0 : index
      %c0_49 = arith.constant 0 : index
      %127 = vector.load %arg8[%c0_48, %c0_49] : memref<1x64xf32, #tpu.memory_space<vmem>>, vector<1x64xf32>
      %128 = vector.shape_cast %127 : vector<1x64xf32> to vector<64xf32>
      %cst_50 = arith.constant dense<0.000000e+00> : vector<2x1xf32>
      %129 = vector.multi_reduction <add>, %126, %cst_50 [2] : vector<2x1x64xf32> to vector<2x1xf32>
      %130 = vector.shape_cast %129 : vector<2x1xf32> to vector<2x1x1xf32>
      %cst_51 = arith.constant 6.400000e+01 : f32
      %131 = vector.broadcast %cst_51 : f32 to vector<2x1x1xf32>
      %132 = arith.divf %130, %131 : vector<2x1x1xf32>
      %133 = vector.broadcast %132 : vector<2x1x1xf32> to vector<2x1x64xf32>
      %134 = arith.subf %126, %133 : vector<2x1x64xf32>
      %135 = arith.mulf %134, %134 : vector<2x1x64xf32>
      %cst_52 = arith.constant dense<0.000000e+00> : vector<2x1xf32>
      %136 = vector.multi_reduction <add>, %135, %cst_52 [2] : vector<2x1x64xf32> to vector<2x1xf32>
      %137 = vector.shape_cast %136 : vector<2x1xf32> to vector<2x1x1xf32>
      %cst_53 = arith.constant 6.400000e+01 : f32
      %138 = vector.broadcast %cst_53 : f32 to vector<2x1x1xf32>
      %139 = arith.divf %137, %138 : vector<2x1x1xf32>
      %cst_54 = arith.constant 9.99999974E-6 : f32
      %140 = vector.broadcast %cst_54 : f32 to vector<2x1x1xf32>
      %141 = arith.addf %139, %140 : vector<2x1x1xf32>
      %142 = math.rsqrt %141 : vector<2x1x1xf32>
      %143 = vector.broadcast %142 : vector<2x1x1xf32> to vector<2x1x64xf32>
      %144 = arith.mulf %134, %143 : vector<2x1x64xf32>
      %145 = vector.shape_cast %128 : vector<64xf32> to vector<1x1x64xf32>
      %146 = vector.broadcast %145 : vector<1x1x64xf32> to vector<2x1x64xf32>
      %147 = arith.mulf %144, %146 : vector<2x1x64xf32>
      %c0_55 = arith.constant 0 : index
      %c0_56 = arith.constant 0 : index
      %c0_57 = arith.constant 0 : index
      %148 = vector.load %arg9[%c0_55, %c0_56, %c0_57] : memref<2x1x64xf32, #tpu.memory_space<vmem>>, vector<2x1x64xf32>
      tpu.vector_store %arg9[%c0_55, %c0_56, %c0_57], %147 {strides = array<i32>} : memref<2x1x64xf32, #tpu.memory_space<vmem>>, vector<2x1x64xf32>,
    } else {
    }
    return
  }
  func.func @transform_0(%arg0: i32) -> (i32, i32, i32) {
    %c0_i32 = arith.constant 0 : i32
    %c0_i32_0 = arith.constant 0 : i32
    %c0_i32_1 = arith.constant 0 : i32
    %c0_i32_2 = arith.constant 0 : i32
    return %c0_i32, %c0_i32_0, %c0_i32_1 : i32, i32, i32
  }
  func.func @transform_1(%arg0: i32) -> (i32, i32, i32) {
    %c0_i32 = arith.constant 0 : i32
    %c0_i32_0 = arith.constant 0 : i32
    %c0_i32_1 = arith.constant 0 : i32
    return %arg0, %c0_i32, %c0_i32_0 : i32, i32, i32
  }
  func.func @transform_2(%arg0: i32) -> (i32, i32, i32) {
    %c0_i32 = arith.constant 0 : i32
    %c0_i32_0 = arith.constant 0 : i32
    %c0_i32_1 = arith.constant 0 : i32
    return %arg0, %c0_i32, %c0_i32_0 : i32, i32, i32
  }
  func.func @transform_3(%arg0: i32) -> (i32, i32, i32) {
    %c0_i32 = arith.constant 0 : i32
    %c0_i32_0 = arith.constant 0 : i32
    %c0_i32_1 = arith.constant 0 : i32
    return %arg0, %c0_i32, %c0_i32_0 : i32, i32, i32
  }
  func.func @transform_4(%arg0: i32) -> (i32, i32, i32) {
    %c0_i32 = arith.constant 0 : i32
    %c0_i32_0 = arith.constant 0 : i32
    %c0_i32_1 = arith.constant 0 : i32
    return %arg0, %c0_i32, %c0_i32_0 : i32, i32, i32
  }
  func.func @transform_5(%arg0: i32) -> (i32, i32, i32) {
    %c0_i32 = arith.constant 0 : i32
    %c0_i32_0 = arith.constant 0 : i32
    %c0_i32_1 = arith.constant 0 : i32
    return %arg0, %c0_i32, %c0_i32_0 : i32, i32, i32
  }
  func.func @transform_6(%arg0: i32) -> (i32, i32, i32) {
    %c0_i32 = arith.constant 0 : i32
    %c0_i32_0 = arith.constant 0 : i32
    %c0_i32_1 = arith.constant 0 : i32
    return %arg0, %c0_i32, %c0_i32_0 : i32, i32, i32
  }
  func.func @transform_7(%arg0: i32) -> (i32, i32) {
    %c0_i32 = arith.constant 0 : i32
    %c0_i32_0 = arith.constant 0 : i32
    %c0_i32_1 = arith.constant 0 : i32
    return %c0_i32, %c0_i32_0 : i32, i32
  }
  func.func @transform_8(%arg0: i32) -> (i32, i32, i32) {
    %c0_i32 = arith.constant 0 : i32
    %c0_i32_0 = arith.constant 0 : i32
    %c0_i32_1 = arith.constant 0 : i32
    %c0_i32_2 = arith.constant 0 : i32
    return %c0_i32, %c0_i32_0, %c0_i32_1 : i32, i32, i32
  }
}

</mosaic_0001>

<bundles_post_ra>
// kernel: tpu_custom_call.1
= control target key start
LH: loop header
LB: loop body
LE: loop exit
PB: predicated region body
PF: predicated region fallthrough
CT: control target
= control target key end

     0   :  { %13 = vsyncpa [#allocation4], 0  ;;  %s3665_s27 = smov 0   ;;  %s4242_s0 = inlined_call_operand.vmem [shape: f32[2,8,64], index: 0, kind: input, shape index: {}]   ;;  %s4243_s1 = inlined_call_operand.vmem [shape: f32[4,1,64], index: 1, kind: input, shape index: {}]   ;;  %s4244_s2 = inlined_call_operand.vmem [shape: bf16[4,64,192], index: 2, kind: input, shape index: {}]   ;;  %s4245_s3 = inlined_call_operand.vmem [shape: bf16[4,64,64], index: 3, kind: input, shape index: {}]   ;;  %s4246_s4 = inlined_call_operand.vmem [shape: f32[4,1,64], index: 4, kind: input, shape index: {}]   ;;  %s4247_s5 = inlined_call_operand.vmem [shape: bf16[4,64,256], index: 5, kind: input, shape index: {}]   ;;  %s4248_s6 = inlined_call_operand.vmem [shape: bf16[4,256,64], index: 6, kind: input, shape index: {}]   ;;  %s4249_s7 = inlined_call_operand.vmem [shape: f32[1,64], index: 7, kind: input, shape index: {}]   ;;  %s4250_s8 = inlined_call_operand.hbm [shape: f32[2,1,64], index: 8, kind: output, shape index: {}]  }
   0x1 LB: > { %s3671_s28 = sadd.s32 4294967295, %s3604_s27   ;;  %p3186_p0 = scmp.ge.s32.totalorder %s3604_s27, 1  ;;  %s3604_s27 = sphi %s3665_s27, %s19_s27  }
   0x2   : > { %p304_p1 = scmp.lt.s32.totalorder %s3604_s27, 5 }
   0x4   : > { %p305_p2 = pnand %p3186_p0, %p304_p1 }
   0x5   : > { %p354_p3 = scmp.lt.s32.totalorder (!%p305_p2), %s3671_s28, 3  ;;  %p3195_p4 = scmp.ne.s32.totalorder (!%p305_p2), %s3671_s28, 0 }
   0x6   : > { %308 = sbr.rel (%p305_p2) target bundleno = 2970 (0xb9a), region = 52 }
   0xd   : > { %s3677_s29 = scalar_select %p354_p3, %s3671_s28, 3 }
   0xe   : > { %384 = sbr.rel (%p3195_p4) target bundleno = 21 (0x15), region = 56  ;;  %v385_v0 = vld [vmem:[%s4242_s0] sm:$0xff] (!%p3195_p4)  ;;  %vm387_vm0 = vcmask (!%p3195_p4), 523264   ;;  %v386_v1 = vld [vmem:[%s4242_s0 + $0x8] sm:$0xff] (!%p3195_p4) }
   0xf   : > { %s356_s10 = scalar_lea.vmem %s4243_s1, %s3677_s29  ;;  %s3271_s11 = sshll.u32 %s3677_s29, 6  ;;  %388 = vst.msk [vmem:[#allocation2] sm:$0xff] (!%p3195_p4), %vm387_vm0, %v385_v0  ;;  %389 = vst.msk [vmem:[#allocation2 + $0x8] sm:$0xff] (!%p3195_p4), %vm387_vm0, %v386_v1 }
  0x10   : > { %s3687_s14 = scalar_lea.vmem %s4244_s2, %s3271_s11  ;;  %s3272_s15 = sshll.u32 %s3677_s29, 5 }
  0x11   : > { %s3693_s18 = scalar_lea.vmem %s4245_s3, %s3272_s15  ;;  %s369_s21 = scalar_lea.vmem %s4246_s4, %s3677_s29 }
  0x12   : > { %s3702_s24 = scalar_lea.vmem %s4247_s5, %s3271_s11  ;;  %s3274_s25 = sshll.u32 %s3677_s29, 7 }
  0x13   : > { %s3708_s9 = scalar_lea.vmem %s4248_s6, %s3274_s25 }
  0x15 PF: > { %vm393_vm1 = vcmask 523264   ;;  %v3470_v16 = vld [vmem:[%s3687_s14 + $0x4] ss:$8 sps:$4 sm:$0xff]   ;;  %v3472_v17 = vld [vmem:[%s3687_s14] ss:$8 sps:$4 sm:$0xff]   ;;  %v3606_v21 = vmov 0   ;;  %v551_v54 = vlaneseq }
  0x16   : > { %v390_v2 = vld [vmem:[#allocation2] sm:$0xff]  ;;  %v391_v3 = vld [vmem:[#allocation2 + $0x8] sm:$0xff]  ;;  %v3473_v18 = vld [vmem:[%s3687_s14 + $0x14] ss:$8 sps:$4 sm:$0xff]   ;;  %481 = vmatprep.subr.bf16.mxu1 %v3470_v16  ;;  %513 = vmatprep.mubr.bf16.mxu1 %v3606_v21  ;;  %s3608_s19 = smov 112   ;;  %s3609_s20 = smov 80  }
  0x17   : > { %v394_v4 = vsel %vm393_vm1, %v390_v2, 0.0  ;;  %v397_v5 = vsel %vm393_vm1, %v391_v3, 0.0  ;;  %482 = vmatpush1.bf16.msra.mxu1 %v3472_v17  ;;  %v3475_v19 = vld [vmem:[%s3687_s14 + $0x10] ss:$8 sps:$4 sm:$0xff]   ;;  %v3476_v20 = vld [vmem:[%s3687_s14 + $0x24] ss:$8 sps:$4 sm:$0xff]  }
  0x18   : > { %395 = vadd.xlane.f32.xlu0 %v394_v4  ;;  %483 = vmatprep.subr.bf16.mxu1 %v3473_v18  ;;  %v3478_v22 = vld [vmem:[%s3687_s14 + $0x20] ss:$8 sps:$4 sm:$0xff]   ;;  %v3479_v23 = vld [vmem:[%s3687_s14 + $0x34] ss:$8 sps:$4 sm:$0xff]   ;;  %v3481_v24 = vld [vmem:[%s3687_s14 + $0x30] ss:$8 sps:$4 sm:$0xff]  }
  0x19   : > { %v3196_v34 = vld [vmem:[%s356_s10] ss:$0 sm:$0xff]  ;;  %s3607_s14 = smov 96   ;;  %s3610_s10 = smov 64   ;;  %v3611_v48 = vmov 0.0   ;;  %vm3612_vm2 = vmmov 0  }
  0x1a   : > { %3346 = vmatprep.subr.bf16.mxu0 %v3611_v48  ;;  %3348 = vmatprep.mubr.msk.bf16.mxu0 %vm3612_vm2, %v3611_v48  ;;  %v3613_v52 = vmov 1983009808   ;;  %v3614_v56 = vmov 1934713408   ;;  %v3777_v59 = vshrl.u32 %v551_v54, 7  ;;  %vm1436_vm3 = vcmask 130048  }
  0x1b   : > { %484 = vmatpush1.bf16.msra.mxu1 %v3475_v19  ;;  %v549_v53 = vunpack.c.l.s4 %v3613_v52  ;;  %v581_v57 = vunpack.c.l.s4 %v3614_v56  ;;  %vm1912_vm4 = vcmask 1043456   ;;  %vm1820_vm6 = vcmask 64512   ;;  %s3616_s22 = smov 16   ;;  %s3617_s23 = smov 48  }
  0x1c   : > { %398 = vadd.xlane.f32.xlu0 %v397_v5  ;;  %485 = vmatprep.subr.bf16.mxu1 %v3476_v20  ;;  %vm2615_vm7 = vcmask 261120   ;;  %vm2618_vm8 = vcmask 392192   ;;  %p3265_p5 = scmp.ne.s32.totalorder %s3671_s28, 3 }
  0x1d   : > { %v550_v58 = vunpack.c.0.s8 %v549_v53  ;;  %v582_v62 = vunpack.c.0.s8 %v581_v57  ;;  %vm3044_vm9 = vcmask (!%p3265_p5), 523271  }
  0x1f   : > { %486 = vmatpush1.bf16.msra.mxu1 %v3478_v22  ;;  %v3780_v63 = vsub.s32 %v550_v58, %v3777_v59 }
  0x20   : > { %487 = vmatprep.subr.bf16.mxu1 %v3479_v23 }
  0x23   : > { %488 = vmatpush1.bf16.msra.mxu1 %v3481_v24 }
  0x24   : > { %3334 = vmatprep.subr.bf16.mxu1 %v3611_v48 }
  0xa5   : > { %v396_v6 = vpop.xlane.xlu0 %395 }
  0xa6   : > { %v401_v7 = vmul.f32 0.015625, %v396_v6  ;;  %v3783_v6 = vsub.s32 %v582_v62, %v3777_v59 }
  0xa8   : > { %v403_v8 = vsub.f32 %v390_v2, %v401_v7 }
  0xa9   : > { %v399_v9 = vpop.xlane.xlu0 %398 }
  0xaa   : > { %v402_v10 = vmul.f32 0.015625, %v399_v9  ;;  %v405_v11 = vmul.f32 %v403_v8, %v403_v8 }
  0xac   : > { %v404_v12 = vsub.f32 %v391_v3, %v402_v10  ;;  %v407_v13 = vsel %vm393_vm1, %v405_v11, 0.0 }
  0xad   : > { %408 = vadd.xlane.f32.xlu1 %v407_v13 }
  0xae   : > { %v406_v14 = vmul.f32 %v404_v12, %v404_v12 }
  0xb0   : > { %v410_v15 = vsel %vm393_vm1, %v406_v14, 0.0 }
  0xb1   : > { %411 = vadd.xlane.f32.xlu1 %v410_v15 }
 0x13a   : > { %v409_v25 = vpop.xlane.xlu1 %408 }
 0x13b   : > { %v413_v26 = vmul.f32 0.015625, %v409_v25 }
 0x13d   : > { %v415_v27 = vadd.f32 1e-05, %v413_v26 }
 0x13e   : > { %v412_v28 = vpop.xlane.xlu1 %411 }
 0x13f   : > { %3514 = vrsqrt.f32 %v415_v27  ;;  %v414_v29 = vmul.f32 0.015625, %v412_v28 }
 0x141   : > { %v416_v30 = vadd.f32 1e-05, %v414_v29 }
 0x143   : > { %3516 = vrsqrt.f32 %v416_v30 }
 0x149   : > { %v3515_v31 = vpop.eup %3514 }
 0x14a   : > { %v419_v32 = vmul.f32 %v3515_v31, %v403_v8 }
 0x14c   : > { %v427_v36 = vmul.f32 %v3196_v34, %v419_v32 }
 0x14d   : > { %v3517_v33 = vpop.eup %3516 }
 0x14e   : > { %v420_v35 = vmul.f32 %v3517_v33, %v404_v12 }
 0x150   : > { %v428_v37 = vmul.f32 %v3196_v34, %v420_v35 }
 0x152   : > { %v429_v38 = vpack.c.bf16 %v428_v37, %v427_v36 }
 0x154   : > { %3205 = vmatmul.mubr.msk.bf16.vlgmr.msra.gmra.mrb[0].mxu1 %vm393_vm1, %v429_v38 }
 0x155   : > { %3336 = vmatprep.mubr.msk.bf16.mxu1 %vm3612_vm2, %v3611_v48 }
 0x227   : > { %v515_v39 = vpop.f32.mrb[0].mxu1 }
 0x228   : > { %824 = vrot.lane.b32.xlu1 %v515_v39, %s3607_s14  ;;  %820 = vrot.lane.b32.xlu0 %v515_v39, %s3608_s19  ;;  %v3738_v40 = vpop.f32.mrb[1].mxu1  ;;  %v3746_v45 = vmul.f32 0.25, %v515_v39 }
 0x229   : > { %v519_v41 = vpop.f32.mrb[2].mxu1 }
 0x22a   : > { %v3740_v42 = vpop.f32.mrb[3].mxu1  ;;  %v3756_v51 = vmul.f32 0.25, %v519_v41 }
 0x22c   : > { %828 = vrot.lane.b32.xlu1 %v515_v39, %s3609_s20  ;;  %826 = vrot.lane.b32.xlu0 %v519_v41, %s3607_s14 }
 0x230   : > { %832 = vrot.lane.b32.xlu0 %v515_v39, %s3610_s10  ;;  %822 = vrot.lane.b32.xlu1 %v519_v41, %s3608_s19 }
 0x234   : > { %830 = vrot.lane.b32.xlu1 %v519_v41, %s3609_s20 }
 0x29a   : > { %v825_v43 = vpop.permute.xlu1 %824  ;;  %v821_v44 = vpop.permute.xlu0 %820 }
 0x29b   : > { %840 = vrot.lane.b32.xlu0 %v825_v43, %s3610_s10  ;;  %836 = vrot.lane.b32.xlu1 %v821_v44, %s3610_s10 }
 0x29e   : > { %v829_v46 = vpop.permute.xlu1 %828  ;;  %v827_v49 = vpop.permute.xlu0 %826 }
 0x29f   : > { %528 = vrot.lane.b32.xlu0 %v3746_v45, %s3608_s19  ;;  %844 = vrot.lane.b32.xlu1 %v829_v46, %s3610_s10 }
 0x2a2   : > { %v823_v47 = vpop.permute.xlu1 %822  ;;  %v833_v55 = vpop.permute.xlu0 %832 }
 0x2a3   : > { %540 = vrot.lane.b32.xlu0 %v3746_v45, %s3609_s20  ;;  %534 = vrot.lane.b32.xlu1 %v3746_v45, %s3607_s14 }
 0x2a6   : > { %v831_v50 = vpop.permute.xlu1 %830 }
 0x2a7   : > { %834 = vrot.lane.b32.xlu1 %v519_v41, %s3610_s10  ;;  %838 = vrot.lane.b32.xlu0 %v823_v47, %s3610_s10 }
 0x2ab   : > { %842 = vrot.lane.b32.xlu1 %v827_v49, %s3610_s10  ;;  %846 = vrot.lane.b32.xlu0 %v831_v50, %s3610_s10 }
 0x2af   : > { %536 = vrot.lane.b32.xlu0 %v3756_v51, %s3607_s14  ;;  %530 = vrot.lane.b32.xlu1 %v3756_v51, %s3608_s19 }
 0x2b3   : > { %1130 = vrot.lane.b32.xlu0 %v3738_v40, %s3608_s19  ;;  %542 = vrot.lane.b32.xlu1 %v3756_v51, %s3609_s20 }
 0x2b7   : > { %1142 = vrot.lane.b32.xlu0 %v3738_v40, %s3609_s20  ;;  %1136 = vrot.lane.b32.xlu1 %v3738_v40, %s3607_s14 }
 0x2bb   : > { %1132 = vrot.lane.b32.xlu1 %v3740_v42, %s3608_s19 }
 0x30d   : > { %v841_v60 = vpop.permute.xlu0 %840  ;;  %v837_v61 = vpop.permute.xlu1 %836 }
 0x30e   : > { %v856_v0 = vcombine.low %v833_v55, %v841_v60  ;;  %v857_v1 = vcombine.high %v833_v55, %v841_v60 }
 0x310   : > { %v864_v7 = vrot.slane %v856_v0, %v3780_v63  ;;  %v871_v8 = vrot.slane %v857_v1, %v3780_v63 }
 0x311   : > { %v529_v2 = vpop.permute.xlu0 %528  ;;  %v845_v3 = vpop.permute.xlu1 %844 }
 0x312   : > { %v872_v4 = vcombine.low %v837_v61, %v845_v3  ;;  %v873_v5 = vcombine.high %v837_v61, %v845_v3 }
 0x314   : > { %v880_v9 = vrot.slane %v872_v4, %v3780_v63  ;;  %v887_v10 = vrot.slane %v873_v5, %v3780_v63 }
 0x315   : > { %v541_v11 = vpop.permute.xlu0 %540  ;;  %v535_v12 = vpop.permute.xlu1 %534 }
 0x316   : > { %v888_v13 = vcombine.low %v864_v7, %v880_v9  ;;  %v889_v14 = vcombine.high %v864_v7, %v880_v9  ;;  %v904_v15 = vcombine.low %v871_v8, %v887_v10  ;;  %v905_v16 = vcombine.high %v871_v8, %v887_v10 }
 0x317   : > { %v562_v17 = vcombine.low %v529_v2, %v541_v11  ;;  %v563_v18 = vcombine.high %v529_v2, %v541_v11  ;;  %v546_v19 = vcombine.low %v3746_v45, %v535_v12  ;;  %v547_v20 = vcombine.high %v3746_v45, %v535_v12 }
 0x318   : > { %v896_v22 = vrot.slane %v888_v13, %v3783_v6  ;;  %v903_v23 = vrot.slane %v889_v14, %v3783_v6  ;;  %v912_v24 = vrot.slane %v904_v15, %v3783_v6  ;;  %v919_v25 = vrot.slane %v905_v16, %v3783_v6 }
 0x319   : > { %v570_v26 = vrot.slane %v562_v17, %v3780_v63  ;;  %v577_v27 = vrot.slane %v563_v18, %v3780_v63  ;;  %v554_v28 = vrot.slane %v546_v19, %v3780_v63  ;;  %v561_v29 = vrot.slane %v547_v20, %v3780_v63  ;;  %v839_v30 = vpop.permute.xlu0 %838  ;;  %v835_v31 = vpop.permute.xlu1 %834 }
 0x31a   : > { %v992_v32 = vcombine.low %v896_v22, %v903_v23  ;;  %v3210_v33 = vcombine.high %v896_v22, %v903_v23  ;;  %v1008_v34 = vcombine.low %v912_v24, %v919_v25  ;;  %v3211_v35 = vcombine.high %v912_v24, %v919_v25 }
 0x31b   : > { %v578_v36 = vcombine.low %v554_v28, %v570_v26  ;;  %v579_v37 = vcombine.high %v554_v28, %v570_v26  ;;  %v594_v38 = vcombine.low %v561_v29, %v577_v27  ;;  %v595_v39 = vcombine.high %v561_v29, %v577_v27 }
 0x31c   : > { %v3800_v41 = vrot.slane %v992_v32, %v3780_v63  ;;  %v3803_v43 = vrot.slane %v3210_v33, %v3780_v63  ;;  %v3806_v44 = vrot.slane %v1008_v34, %v3780_v63  ;;  %v3809_v45 = vrot.slane %v3211_v35, %v3780_v63 }
 0x31d   : > { %v586_v46 = vrot.slane %v578_v36, %v3783_v6  ;;  %v593_v47 = vrot.slane %v579_v37, %v3783_v6  ;;  %v602_v49 = vrot.slane %v594_v38, %v3783_v6  ;;  %v609_v50 = vrot.slane %v595_v39, %v3783_v6  ;;  %v847_v52 = vpop.permute.xlu0 %846  ;;  %v843_v53 = vpop.permute.xlu1 %842 }
 0x31e   : > { %v940_v55 = vcombine.low %v839_v30, %v847_v52  ;;  %v941_v56 = vcombine.high %v839_v30, %v847_v52  ;;  %v924_v57 = vcombine.low %v835_v31, %v843_v53  ;;  %v925_v58 = vcombine.high %v835_v31, %v843_v53 }
 0x31f   : > { %v682_v60 = vcombine.low %v586_v46, %v593_v47  ;;  %v3206_v61 = vcombine.high %v586_v46, %v593_v47  ;;  %v698_v62 = vcombine.low %v602_v49, %v609_v50  ;;  %v3207_v0 = vcombine.high %v602_v49, %v609_v50 }
 0x320   : > { %v948_v1 = vrot.slane %v940_v55, %v3780_v63  ;;  %v955_v2 = vrot.slane %v941_v56, %v3780_v63  ;;  %v932_v3 = vrot.slane %v924_v57, %v3780_v63  ;;  %v939_v4 = vrot.slane %v925_v58, %v3780_v63 }
 0x321   : > { %v3820_v5 = vrot.slane %v682_v60, %v3780_v63  ;;  %v3823_v7 = vrot.slane %v3206_v61, %v3780_v63  ;;  %v3826_v8 = vrot.slane %v698_v62, %v3780_v63  ;;  %v3829_v9 = vrot.slane %v3207_v0, %v3780_v63  ;;  %v537_v10 = vpop.permute.xlu0 %536  ;;  %v531_v11 = vpop.permute.xlu1 %530 }
 0x322   : > { %v956_v12 = vcombine.low %v932_v3, %v948_v1  ;;  %v957_v13 = vcombine.high %v932_v3, %v948_v1  ;;  %v972_v14 = vcombine.low %v939_v4, %v955_v2  ;;  %v973_v15 = vcombine.high %v939_v4, %v955_v2 }
 0x323   : > { %v614_v16 = vcombine.low %v3756_v51, %v537_v10  ;;  %v615_v17 = vcombine.high %v3756_v51, %v537_v10  ;;  %v1024_v25 = vcombine.low %v3800_v41, %v3803_v43  ;;  %v1040_v26 = vcombine.low %v3806_v44, %v3809_v45 }
 0x324   : > { %v964_v18 = vrot.slane %v956_v12, %v3783_v6  ;;  %v971_v19 = vrot.slane %v957_v13, %v3783_v6  ;;  %v980_v20 = vrot.slane %v972_v14, %v3783_v6  ;;  %v987_v22 = vrot.slane %v973_v15, %v3783_v6 }
 0x325   : > { %v1131_v23 = vpop.permute.xlu0 %1130  ;;  %v543_v24 = vpop.permute.xlu1 %542  ;;  %v714_v51 = vcombine.low %v3820_v5, %v3823_v7  ;;  %v730_v27 = vcombine.low %v3826_v8, %v3829_v9  ;;  %v622_v28 = vrot.slane %v614_v16, %v3780_v63  ;;  %v629_v29 = vrot.slane %v615_v17, %v3780_v63 }
 0x326   : > { %v630_v30 = vcombine.low %v531_v11, %v543_v24  ;;  %v631_v31 = vcombine.high %v531_v11, %v543_v24  ;;  %v3848_v32 = vrot.slane %v1024_v25, %v3783_v6  ;;  %v1048_v33 = vrot.slane %v1040_v26, %v3783_v6 }
 0x327   : > { %v1060_v34 = vcombine.low %v964_v18, %v971_v19  ;;  %v3212_v35 = vcombine.high %v964_v18, %v971_v19  ;;  %v1076_v36 = vcombine.low %v980_v20, %v987_v22  ;;  %v3213_v37 = vcombine.high %v980_v20, %v987_v22 }
 0x328   : > { %v638_v38 = vrot.slane %v630_v30, %v3780_v63  ;;  %v645_v39 = vrot.slane %v631_v31, %v3780_v63  ;;  %v1056_v46 = vcombine.low %v3848_v32, %v1048_v33  ;;  %v1025_v47 = vcombine.high %v3800_v41, %v3803_v43 }
 0x329   : > { %v1143_v49 = vpop.permute.xlu0 %1142  ;;  %v1137_v50 = vpop.permute.xlu1 %1136  ;;  %v1041_v52 = vcombine.high %v3806_v44, %v3809_v45  ;;  %v3876_v16 = vrot.slane %v1060_v34, %v3780_v63  ;;  %v1075_v20 = vrot.slane %v3212_v35, %v3780_v63  ;;  %v1083_v22 = vrot.slane %v1076_v36, %v3780_v63 }
 0x32a   : > { %v1164_v53 = vcombine.low %v1131_v23, %v1143_v49  ;;  %v1165_v55 = vcombine.high %v1131_v23, %v1143_v49  ;;  %v1148_v56 = vcombine.low %v3738_v40, %v1137_v50  ;;  %v646_v57 = vcombine.low %v622_v28, %v638_v38 }
 0x32b   : > { %v647_v58 = vcombine.high %v622_v28, %v638_v38  ;;  %v662_v60 = vcombine.low %v629_v29, %v645_v39  ;;  %v663_v61 = vcombine.high %v629_v29, %v645_v39  ;;  %v1428_v62 = vpack.c.bf16 %v1056_v46, %v1056_v46 }
 0x32c   : > { %v3860_v0 = vrot.slane %v1025_v47, %v3783_v6  ;;  %v3863_v1 = vrot.slane %v1041_v52, %v3783_v6  ;;  %v1172_v41 = vrot.slane %v1164_v53, %v3780_v63  ;;  %v654_v43 = vrot.slane %v646_v57, %v3783_v6 }
 0x32d   : > { %v661_v44 = vrot.slane %v647_v58, %v3783_v6  ;;  %v670_v45 = vrot.slane %v662_v60, %v3783_v6  ;;  %v677_v2 = vrot.slane %v663_v61, %v3783_v6  ;;  %v1441_v3 = vsel %vm1436_vm3, %v1428_v62, 0 }
 0x32e   : > { %v1058_v4 = vcombine.low %v3860_v0, %v3863_v1  ;;  %v1179_v10 = vrot.slane %v1165_v55, %v3780_v63  ;;  %v1149_v11 = vcombine.high %v3738_v40, %v1137_v50  ;;  %3335 = vmatpush3.bf16.xpose.msra.mxu1 %v1441_v3  ;;  %v1156_v18 = vrot.slane %v1148_v56, %v3780_v63 }
 0x32f   : > { %v750_v12 = vcombine.low %v654_v43, %v661_v44  ;;  %v3208_v13 = vcombine.high %v654_v43, %v661_v44  ;;  %v766_v14 = vcombine.low %v670_v45, %v677_v2  ;;  %v3209_v15 = vcombine.high %v670_v45, %v677_v2  ;;  %3340 = vmatprep.subr.bf16.mxu1 %v3611_v48 }
 0x330   : > { %v1430_v17 = vpack.c.bf16 %v1058_v4, %v1058_v4  ;;  %v1163_v19 = vrot.slane %v1149_v11, %v3780_v63  ;;  %v1091_v40 = vrot.slane %v3213_v37, %v3780_v63  ;;  %v722_v23 = vrot.slane %v714_v51, %v3783_v6 }
 0x331   : > { %v1180_v25 = vcombine.low %v1156_v18, %v1172_v41  ;;  %v1181_v26 = vcombine.high %v1156_v18, %v1172_v41  ;;  %v3887_v29 = vrot.slane %v750_v12, %v3780_v63  ;;  %v3890_v30 = vrot.slane %v3208_v13, %v3780_v63 }
 0x332   : > { %v1533_v24 = vsel %vm1436_vm3, %v1430_v17, 0  ;;  %v1196_v28 = vcombine.low %v1163_v19, %v1179_v10  ;;  %v3893_v31 = vrot.slane %v766_v14, %v3780_v63  ;;  %v3896_v34 = vrot.slane %v3209_v15, %v3780_v63 }
 0x333   : > { %3347 = vmatpush3.bf16.xpose.msra.mxu0 %v1533_v24  ;;  %v1188_v51 = vrot.slane %v1180_v25, %v3783_v6  ;;  %v1195_v35 = vrot.slane %v1181_v26, %v3783_v6  ;;  %v1197_v36 = vcombine.high %v1163_v19, %v1179_v10  ;;  %v738_v38 = vrot.slane %v730_v27, %v3783_v6 }
 0x334   : > { %v1204_v37 = vrot.slane %v1196_v28, %v3783_v6  ;;  %3358 = vmatprep.subr.bf16.mxu0 %v3611_v48  ;;  %v715_v39 = vcombine.high %v3820_v5, %v3823_v7  ;;  %v731_v46 = vcombine.high %v3826_v8, %v3829_v9  ;;  %v1057_v47 = vcombine.high %v3848_v32, %v1048_v33 }
 0x335   : > { %v1211_v49 = vrot.slane %v1197_v36, %v3783_v6  ;;  %v1284_v50 = vcombine.low %v1188_v51, %v1195_v35  ;;  %v3214_v52 = vcombine.high %v1188_v51, %v1195_v35  ;;  %v1092_v53 = vcombine.low %v3876_v16, %v1075_v20 }
 0x336   : > { %v746_v55 = vcombine.low %v722_v23, %v738_v38  ;;  %v729_v56 = vrot.slane %v715_v39, %v3783_v6  ;;  %v745_v57 = vrot.slane %v731_v46, %v3783_v6  ;;  %v1429_v27 = vpack.c.bf16 %v1057_v47, %v1057_v47 }
 0x337   : > { %v782_v5 = vcombine.low %v3887_v29, %v3890_v30  ;;  %v798_v7 = vcombine.low %v3893_v31, %v3896_v34  ;;  %v1291_v8 = vrot.slane %v1284_v50, %v3780_v63  ;;  %v1300_v33 = vcombine.low %v1204_v37, %v1211_v49 }
 0x338   : > { %v1420_v9 = vpack.c.bf16 %v746_v55, %v746_v55  ;;  %v748_v32 = vcombine.low %v729_v56, %v745_v57  ;;  %v3215_v58 = vcombine.high %v1204_v37, %v1211_v49  ;;  %v1100_v60 = vrot.slane %v1092_v53, %v3783_v6 }
 0x339   : > { %v1108_v61 = vcombine.low %v1083_v22, %v1091_v40  ;;  %v1299_v62 = vrot.slane %v3214_v52, %v3780_v63  ;;  %v1487_v43 = vsel %vm1436_vm3, %v1429_v27, 0  ;;  %v1059_v44 = vcombine.high %v3860_v0, %v3863_v1 }
 0x33a   : > { %3337 = vmatmul.mubr.msk.bf16.vlgmr.msra.gmra.mrb[4].mxu1 %vm1436_vm3, %v1420_v9  ;;  %v1422_v41 = vpack.c.bf16 %v748_v32, %v748_v32  ;;  %v747_v2 = vcombine.high %v722_v23, %v738_v38  ;;  %v1093_v3 = vcombine.high %v3876_v16, %v1075_v20  ;;  %v790_v4 = vrot.slane %v782_v5, %v3783_v6 }
 0x33b   : > { %3341 = vmatpush3.bf16.xpose.msra.mxu1 %v1487_v43  ;;  %v1116_v45 = vrot.slane %v1108_v61, %v3783_v6  ;;  %3342 = vmatprep.mubr.msk.bf16.mxu1 %vm3612_vm2, %v3611_v48  ;;  %v806_v10 = vrot.slane %v798_v7, %v3783_v6  ;;  %v1109_v11 = vcombine.high %v1083_v22, %v1091_v40  ;;  %v1808_v43 = vand.u32 127, %v551_v54 }
 0x33c   : > { %3349 = vmatmul.mubr.msk.bf16.vlgmr.msra.gmra.mrb[0].mxu0 %vm1436_vm3, %v1422_v41  ;;  %3352 = vmatprep.subr.bf16.mxu1 %v3611_v48  ;;  %v1307_v0 = vrot.slane %v1300_v33, %v3780_v63  ;;  %v1315_v1 = vrot.slane %v3215_v58, %v3780_v63  ;;  %v1107_v13 = vrot.slane %v1093_v3, %v3783_v6 }
 0x33d   : > { %v1124_v12 = vcombine.low %v1100_v60, %v1116_v45  ;;  %3360 = vmatprep.mubr.msk.bf16.mxu0 %vm3612_vm2, %v3611_v48  ;;  %v1431_v14 = vpack.c.bf16 %v1059_v44, %v1059_v44  ;;  %v1123_v15 = vrot.slane %v1109_v11, %v3783_v6  ;;  %v1421_v17 = vpack.c.bf16 %v747_v2, %v747_v2 }
 0x33e   : > { %v814_v18 = vcombine.low %v790_v4, %v806_v10  ;;  %v1316_v22 = vcombine.low %v1291_v8, %v1299_v62  ;;  %v1332_v40 = vcombine.low %v1307_v0, %v1315_v1  ;;  %v1125_v24 = vcombine.high %v1100_v60, %v1116_v45 }
 0x33f   : > { %v1432_v16 = vpack.c.bf16 %v1124_v12, %v1124_v12  ;;  %v1126_v20 = vcombine.low %v1107_v13, %v1123_v15  ;;  %v1579_v23 = vsel %vm1436_vm3, %v1431_v14, 0  ;;  %v783_v25 = vcombine.high %v3887_v29, %v3890_v30 }
 0x340   : > { %v799_v26 = vcombine.high %v3893_v31, %v3896_v34  ;;  %v749_v28 = vcombine.high %v729_v56, %v745_v57  ;;  %v1424_v51 = vpack.c.bf16 %v814_v18, %v814_v18  ;;  %v1317_v35 = vcombine.high %v1291_v8, %v1299_v62 }
 0x341   : > { %v1625_v19 = vsel %vm1436_vm3, %v1432_v16, 0  ;;  %v1434_v36 = vpack.c.bf16 %v1126_v20, %v1126_v20  ;;  %v1324_v37 = vrot.slane %v1316_v22, %v3783_v6  ;;  %v1340_v38 = vrot.slane %v1332_v40, %v3783_v6 }
 0x342   : > { %3359 = vmatpush3.bf16.xpose.msra.mxu0 %v1625_v19  ;;  %3343 = vmatmul.mubr.msk.bf16.vlgmr.msra.gmra.mrb[8].mxu1 %vm1436_vm3, %v1421_v17  ;;  %v1333_v29 = vcombine.high %v1307_v0, %v1315_v1  ;;  %v1433_v30 = vpack.c.bf16 %v1125_v24, %v1125_v24  ;;  %v1331_v31 = vrot.slane %v1317_v35, %v3783_v6 }
 0x343   : > { %3353 = vmatpush3.bf16.xpose.msra.mxu1 %v1579_v23  ;;  %3370 = vmatprep.subr.bf16.mxu0 %v3611_v48  ;;  %v797_v34 = vrot.slane %v783_v25, %v3783_v6  ;;  %v813_v39 = vrot.slane %v799_v26, %v3783_v6  ;;  %v1423_v47 = vpack.c.bf16 %v749_v28, %v749_v28  ;;  %v1717_v49 = vsel %vm1436_vm3, %v1434_v36, 0 }
 0x344   : > { %3354 = vmatprep.mubr.msk.bf16.mxu1 %vm3612_vm2, %v3611_v48  ;;  %3364 = vmatprep.subr.bf16.mxu1 %v3611_v48  ;;  %v1347_v46 = vrot.slane %v1333_v29, %v3783_v6  ;;  %v1348_v50 = vcombine.low %v1324_v37, %v1340_v38  ;;  %v1671_v55 = vsel %vm1436_vm3, %v1433_v30, 0  ;;  %v1127_v56 = vcombine.high %v1107_v13, %v1123_v15 }
 0x345   : > { %v816_v57 = vcombine.low %v797_v34, %v813_v39  ;;  %v815_v27 = vcombine.high %v790_v4, %v806_v10  ;;  %v1349_v58 = vcombine.high %v1324_v37, %v1340_v38  ;;  %v817_v60 = vcombine.high %v797_v34, %v813_v39 }
 0x346   : > { %v3959_v52 = vcombine.low %v1331_v31, %v1347_v46  ;;  %v3961_v53 = vcombine.high %v1331_v31, %v1347_v46  ;;  %v1901_v5 = vpack.c.bf16 %v1348_v50, %v1348_v50  ;;  %v1435_v7 = vpack.c.bf16 %v1127_v56, %v1127_v56 }
 0x347   : > { %v1426_v8 = vpack.c.bf16 %v816_v57, %v816_v57  ;;  %v1425_v9 = vpack.c.bf16 %v815_v27, %v815_v27  ;;  %v1902_v61 = vpack.c.bf16 %v1349_v58, %v1349_v58  ;;  %v1427_v62 = vpack.c.bf16 %v817_v60, %v817_v60 }
 0x348   : > { %v1914_v32 = vsel %vm1912_vm4, %v1901_v5, 0  ;;  %v1763_v33 = vsel %vm1436_vm3, %v1435_v7, 0  ;;  %vm3988_vm5 = vcmp.ge.s32.totalorder %v3777_v59, %v1808_v43 }
 0x349   : > { %3361 = vmatmul.mubr.msk.bf16.vlgmr.msra.gmra.mrb[4].mxu0 %vm1436_vm3, %v1424_v51  ;;  %v1960_v41 = vsel %vm1912_vm4, %v1902_v61, 0 }
 0x34a   : > { %3371 = vmatpush3.bf16.xpose.msra.mxu0 %v1717_v49  ;;  %3355 = vmatmul.mubr.msk.bf16.vlgmr.msra.gmra.mrb[12].mxu1 %vm1436_vm3, %v1423_v47 }
 0x34b   : > { %3365 = vmatpush3.bf16.xpose.msra.mxu1 %v1671_v55  ;;  %3372 = vmatprep.mubr.msk.bf16.mxu0 %vm3612_vm2, %v3611_v48 }
 0x34c   : > { %3382 = vmatprep.subr.bf16.mxu0 %v3611_v48  ;;  %3366 = vmatprep.mubr.msk.bf16.mxu1 %vm3612_vm2, %v3611_v48 }
 0x34d   : > { %3376 = vmatprep.subr.bf16.mxu1 %v3611_v48 }
 0x351   : > { %3373 = vmatmul.mubr.msk.bf16.vlgmr.msra.gmra.mrb[8].mxu0 %vm1436_vm3, %v1426_v8 }
 0x352   : > { %3383 = vmatpush3.bf16.msra.mxu0 %v1914_v32  ;;  %3367 = vmatmul.mubr.msk.bf16.vlgmr.msra.gmra.mrb[16].mxu1 %vm1436_vm3, %v1425_v9  ;;  %v1133_v32 = vpop.permute.xlu1 %1132 }
 0x353   : > { %3377 = vmatpush3.bf16.xpose.msra.mxu1 %v1763_v33  ;;  %3378 = vmatprep.mubr.msk.bf16.mxu1 %vm3612_vm2, %v3611_v48 }
 0x354   : > { %3388 = vmatprep.subr.bf16.mxu1 %v3611_v48  ;;  %3384 = vmatprep.mubr.msk.bf16.mxu0 %vm3612_vm2, %v3611_v48 }
 0x355   : > { %3394 = vmatprep.subr.bf16.mxu0 %v3611_v48 }
 0x35a   : > { %3379 = vmatmul.mubr.msk.bf16.vlgmr.msra.gmra.mrb[20].mxu1 %vm1436_vm3, %v1427_v62 }
 0x35b   : > { %3389 = vmatpush3.bf16.msra.mxu1 %v1960_v41  ;;  %3390 = vmatprep.mubr.msk.bf16.mxu1 %vm3612_vm2, %v3611_v48 }
 0x35c   : > { %3400 = vmatprep.subr.bf16.mxu1 %v3611_v48 }
 0x40d   : > { %v1477_v45 = vpop.f32.mrb[4].mxu1 }
 0x40e   : > { %v1812_v2 = vsel %vm3988_vm5, %v1477_v45, -1e+30  ;;  %v3338_v3 = vpop.f32.mrb[5].mxu1 }
 0x40f   : > { %v1569_v4 = vpop.f32.mrb[0].mxu0  ;;  %v1480_v10 = vpop.f32.mrb[6].mxu1  ;;  %v1821_v11 = vsel %vm1820_vm6, %v1812_v2, -inf  ;;  %v1903_v3 = vpack.c.bf16 %v3959_v52, %v3959_v52 }
 0x410   : > { %v1814_v0 = vsel %vm3988_vm5, %v1569_v4, -1e+30  ;;  %v3350_v1 = vpop.f32.mrb[1].mxu0  ;;  %1822 = vmax.xlane.f32.xlu0 %v1821_v11  ;;  %v3339_v54 = vpop.f32.mrb[7].mxu1 }
 0x411   : > { %v1572_v59 = vpop.f32.mrb[2].mxu0  ;;  %v1827_v12 = vsel %vm1820_vm6, %v1814_v0, -inf }
 0x412   : > { %v3351_v13 = vpop.f32.mrb[3].mxu0  ;;  %1828 = vmax.xlane.f32.xlu1 %v1827_v12  ;;  %v2006_v59 = vsel %vm1912_vm4, %v1903_v3, 0 }
 0x415   : > { %v1523_v14 = vpop.f32.mrb[8].mxu1 }
 0x416   : > { %v1813_v15 = vsel %vm3988_vm5, %v1523_v14, -1e+30  ;;  %v3344_v16 = vpop.f32.mrb[9].mxu1 }
 0x417   : > { %v1526_v17 = vpop.f32.mrb[10].mxu1  ;;  %v1824_v18 = vsel %vm1820_vm6, %v1813_v15, -inf }
 0x418   : > { %1825 = vmax.xlane.f32.xlu1 %v1824_v18  ;;  %v3345_v19 = vpop.f32.mrb[11].mxu1 }
 0x41c   : > { %v1661_v20 = vpop.f32.mrb[4].mxu0 }
 0x41d   : > { %v1816_v22 = vsel %vm3988_vm5, %v1661_v20, -1e+30  ;;  %v3362_v40 = vpop.f32.mrb[5].mxu0  ;;  %v1615_v23 = vpop.f32.mrb[12].mxu1 }
 0x41e   : > { %v1664_v24 = vpop.f32.mrb[6].mxu0  ;;  %v1833_v25 = vsel %vm1820_vm6, %v1816_v22, -inf  ;;  %v4006_v26 = vsel %vm3988_vm5, %v1615_v23, -1e+30  ;;  %v3356_v28 = vpop.f32.mrb[13].mxu1 }
 0x41f   : > { %v3363_v51 = vpop.f32.mrb[7].mxu0  ;;  %1834 = vmax.xlane.f32.xlu0 %v1833_v25  ;;  %v1618_v35 = vpop.f32.mrb[14].mxu1  ;;  %v1830_v36 = vsel %vm1820_vm6, %v4006_v26, -inf }
 0x420   : > { %v3357_v37 = vpop.f32.mrb[15].mxu1 }
 0x423   : > { %1831 = vmax.xlane.f32.xlu0 %v1830_v36 }
 0x424   : > { %v1753_v38 = vpop.f32.mrb[8].mxu0 }
 0x425   : > { %v3374_v29 = vpop.f32.mrb[9].mxu0  ;;  %v1707_v30 = vpop.f32.mrb[16].mxu1  ;;  %v4026_v7 = vsel %vm3988_vm5, %v1753_v38, -1e+30 }
 0x426   : > { %v1756_v31 = vpop.f32.mrb[10].mxu0  ;;  %v4012_v34 = vsel %vm3988_vm5, %v1707_v30, -1e+30  ;;  %v3368_v39 = vpop.f32.mrb[17].mxu1  ;;  %v1839_v8 = vsel %vm1820_vm6, %v4026_v7, -inf }
 0x427   : > { %v3375_v46 = vpop.f32.mrb[11].mxu0  ;;  %v1710_v47 = vpop.f32.mrb[18].mxu1  ;;  %v1836_v49 = vsel %vm1820_vm6, %v4012_v34, -inf }
 0x428   : > { %1837 = vmax.xlane.f32.xlu0 %v1836_v49  ;;  %v3369_v50 = vpop.f32.mrb[19].mxu1 }
 0x429   : > { %1144 = vrot.lane.b32.xlu1 %v3740_v42, %s3609_s20 }
 0x42d   : > { %v1799_v55 = vpop.f32.mrb[20].mxu1 }
 0x42e   : > { %v4020_v56 = vsel %vm3988_vm5, %v1799_v55, -1e+30  ;;  %v3380_v57 = vpop.f32.mrb[21].mxu1 }
 0x42f   : > { %v1802_v27 = vpop.f32.mrb[22].mxu1  ;;  %v1842_v9 = vsel %vm1820_vm6, %v4020_v56, -inf }
 0x430   : > { %v3381_v5 = vpop.f32.mrb[23].mxu1 }
 0x43e   : > { %1138 = vrot.lane.b32.xlu0 %v3740_v42, %s3607_s14 }
 0x44d   : > { %1840 = vmax.xlane.f32.xlu1 %v1839_v8 }
 0x45d   : > { %1843 = vmax.xlane.f32.xlu0 %v1842_v9 }
 0x49d   : > { %v1823_v33 = vpop.xlane.xlu0 %1822 }
 0x49e   : > { %v1845_v58 = vsub.f32 %v1812_v2, %v1823_v33 }
 0x49f   : > { %v1829_v60 = vpop.xlane.xlu1 %1828 }
 0x4a0   : > { %v1847_v61 = vsub.f32 %v1814_v0, %v1829_v60  ;;  %v1853_v62 = vmul.f32 1.442695, %v1845_v58 }
 0x4a2   : > { %v1857_v41 = vmul.f32 1.442695, %v1847_v61  ;;  %3518 = vpow2.f32 %v1853_v62 }
 0x4a4   : > { %3520 = vpow2.f32 %v1857_v41 }
 0x4a5   : > { %v1826_v43 = vpop.xlane.xlu1 %1825 }
 0x4a6   : > { %v1846_v44 = vsub.f32 %v1813_v15, %v1826_v43  ;;  %v1904_v15 = vpack.c.bf16 %v3961_v53, %v3961_v53 }
 0x4a8   : > { %v1855_v45 = vmul.f32 1.442695, %v1846_v44  ;;  %v2052_v24 = vsel %vm1912_vm4, %v1904_v15, 0 }
 0x4a9   : > { %v1145_v17 = vpop.permute.xlu1 %1144 }
 0x4aa   : > { %3522 = vpow2.f32 %v1855_v45  ;;  %v1232_v23 = vcombine.low %v1133_v32, %v1145_v17  ;;  %v1233_v25 = vcombine.high %v1133_v32, %v1145_v17 }
 0x4ac   : > { %v3519_v4 = vpop.eup %3518  ;;  %v1835_v10 = vpop.xlane.xlu0 %1834  ;;  %v1240_v36 = vrot.slane %v1232_v23, %v3780_v63  ;;  %v1247_v37 = vrot.slane %v1233_v25, %v3780_v63 }
 0x4ad   : > { %v1849_v11 = vsub.f32 %v1816_v22, %v1835_v10  ;;  %v1869_v1 = vsel %vm1820_vm6, %v3519_v4, 0.0  ;;  %v1893_v54 = vpack.c.bf16 %v3519_v4, %v3519_v4 }
 0x4ae   : > { %v3521_v2 = vpop.eup %3520  ;;  %1870 = vadd.xlane.f32.xlu0 %v1869_v1 }
 0x4af   : > { %v1861_v0 = vmul.f32 1.442695, %v1849_v11  ;;  %3385 = vmatmul.mubr.msk.bf16.vlgmr.msra.gmra.mrb[12].mxu0 %vm1820_vm6, %v1893_v54  ;;  %v1875_v13 = vsel %vm1820_vm6, %v3521_v2, 0.0  ;;  %v1895_v22 = vpack.c.bf16 %v3521_v2, %v3521_v2 }
 0x4b0   : > { %v1832_v12 = vpop.xlane.xlu0 %1831  ;;  %3395 = vmatpush3.bf16.msra.mxu0 %v2006_v59  ;;  %3396 = vmatprep.mubr.msk.bf16.mxu0 %vm3612_vm2, %v3611_v48 }
 0x4b1   : > { %3524 = vpow2.f32 %v1861_v0  ;;  %v1848_v52 = vsub.f32 %v4006_v26, %v1832_v12  ;;  %3406 = vmatprep.subr.bf16.mxu0 %v3611_v48 }
 0x4b2   : > { %1876 = vadd.xlane.f32.xlu0 %v1875_v13 }
 0x4b3   : > { %v1859_v14 = vmul.f32 1.442695, %v1848_v52 }
 0x4b4   : > { %v3523_v16 = vpop.eup %3522 }
 0x4b5   : > { %3526 = vpow2.f32 %v1859_v14  ;;  %v1838_v18 = vpop.xlane.xlu0 %1837  ;;  %v1872_v19 = vsel %vm1820_vm6, %v3523_v16, 0.0  ;;  %v1894_v20 = vpack.c.bf16 %v3523_v16, %v3523_v16 }
 0x4b6   : > { %v1850_v40 = vsub.f32 %v4012_v34, %v1838_v18  ;;  %1873 = vadd.xlane.f32.xlu1 %v1872_v19 }
 0x4b7   : > { %3391 = vmatmul.mubr.msk.bf16.vlgmr.msra.gmra.mrb[24].mxu1 %vm1820_vm6, %v1894_v20  ;;  %3397 = vmatmul.mubr.msk.bf16.vlgmr.msra.gmra.mrb[16].mxu0 %vm1820_vm6, %v1895_v22 }
 0x4b8   : > { %v1863_v53 = vmul.f32 1.442695, %v1850_v40  ;;  %3401 = vmatpush3.bf16.msra.mxu1 %v2052_v24  ;;  %3402 = vmatprep.mubr.msk.bf16.mxu1 %vm3612_vm2, %v3611_v48 }
 0x4b9   : > { %v1139_v26 = vpop.permute.xlu0 %1138  ;;  %3412 = vmatprep.subr.bf16.mxu1 %v3611_v48  ;;  %3408 = vmatprep.mubr.msk.bf16.mxu0 %vm3612_vm2, %v3611_v48 }
 0x4ba   : > { %3528 = vpow2.f32 %v1863_v53  ;;  %v1216_v28 = vcombine.low %v3740_v42, %v1139_v26  ;;  %v1217_v51 = vcombine.high %v3740_v42, %v1139_v26 }
 0x4bb   : > { %v3525_v35 = vpop.eup %3524 }
 0x4bc   : > { %v1224_v38 = vrot.slane %v1216_v28, %v3780_v63  ;;  %v1231_v29 = vrot.slane %v1217_v51, %v3780_v63  ;;  %v1881_v30 = vsel %vm1820_vm6, %v3525_v35, 0.0  ;;  %v1897_v17 = vpack.c.bf16 %v3525_v35, %v3525_v35 }
 0x4bd   : > { %1882 = vadd.xlane.f32.xlu0 %v1881_v30 }
 0x4be   : > { %v1248_v31 = vcombine.low %v1224_v38, %v1240_v36  ;;  %v1249_v34 = vcombine.high %v1224_v38, %v1240_v36  ;;  %v1264_v39 = vcombine.low %v1231_v29, %v1247_v37  ;;  %v1265_v46 = vcombine.high %v1231_v29, %v1247_v37  ;;  %v3482_v37 = vld [vmem:[%s3693_s18] sm:$0xff]   ;;  %v3484_v29 = vld [vmem:[%s3693_s18 + $0x10] sm:$0xff]  }
 0x4bf   : > { %v3527_v47 = vpop.eup %3526 }
 0x4c0   : > { %v1256_v49 = vrot.slane %v1248_v31, %v3783_v6  ;;  %v1263_v42 = vrot.slane %v1249_v34, %v3783_v6  ;;  %v1272_v50 = vrot.slane %v1264_v39, %v3783_v6  ;;  %v1279_v55 = vrot.slane %v1265_v46, %v3783_v6 }
 0x4c1   : > { %v1878_v57 = vsel %vm1820_vm6, %v3527_v47, 0.0  ;;  %v1896_v27 = vpack.c.bf16 %v3527_v47, %v3527_v47 }
 0x4c2   : > { %v1352_v5 = vcombine.low %v1256_v49, %v1263_v42  ;;  %v3216_v8 = vcombine.high %v1256_v49, %v1263_v42  ;;  %v1368_v9 = vcombine.low %v1272_v50, %v1279_v55  ;;  %v3217_v32 = vcombine.high %v1272_v50, %v1279_v55  ;;  %1879 = vadd.xlane.f32.xlu1 %v1878_v57 }
 0x4c3   : > { %3403 = vmatmul.mubr.msk.bf16.vlgmr.msra.gmra.mrb[28].mxu1 %vm1820_vm6, %v1896_v27 }
 0x4c4   : > { %v3529_v33 = vpop.eup %3528  ;;  %v1359_v58 = vrot.slane %v1352_v5, %v3780_v63  ;;  %v1367_v60 = vrot.slane %v3216_v8, %v3780_v63  ;;  %v1375_v61 = vrot.slane %v1368_v9, %v3780_v63  ;;  %v1383_v62 = vrot.slane %v3217_v32, %v3780_v63  ;;  %3414 = vmatprep.mubr.msk.bf16.mxu1 %vm3612_vm2, %v3611_v48 }
 0x4c5   : > { %v1884_v41 = vsel %vm1820_vm6, %v3529_v33, 0.0  ;;  %v1898_v18 = vpack.c.bf16 %v3529_v33, %v3529_v33 }
 0x4c6   : > { %1885 = vadd.xlane.f32.xlu1 %v1884_v41  ;;  %v1384_v43 = vcombine.low %v1359_v58, %v1367_v60  ;;  %v1400_v44 = vcombine.low %v1375_v61, %v1383_v62  ;;  %v1385_v45 = vcombine.high %v1359_v58, %v1367_v60  ;;  %v1401_v3 = vcombine.high %v1375_v61, %v1383_v62 }
 0x4c8   : > { %v1392_v4 = vrot.slane %v1384_v43, %v3783_v6  ;;  %v1408_v10 = vrot.slane %v1400_v44, %v3783_v6  ;;  %v1399_v11 = vrot.slane %v1385_v45, %v3783_v6  ;;  %v1415_v1 = vrot.slane %v1401_v3, %v3783_v6 }
 0x4ca   : > { %v1416_v54 = vcombine.low %v1392_v4, %v1408_v10  ;;  %v1417_v2 = vcombine.high %v1392_v4, %v1408_v10  ;;  %v1418_v0 = vcombine.low %v1399_v11, %v1415_v1  ;;  %v1419_v59 = vcombine.high %v1399_v11, %v1415_v1 }
 0x4cc   : > { %v1905_v12 = vpack.c.bf16 %v1416_v54, %v1416_v54  ;;  %v1906_v52 = vpack.c.bf16 %v1417_v2, %v1417_v2  ;;  %v1907_v15 = vpack.c.bf16 %v1418_v0, %v1418_v0  ;;  %v1908_v16 = vpack.c.bf16 %v1419_v59, %v1419_v59 }
 0x4ce   : > { %v2098_v13 = vsel %vm1912_vm4, %v1905_v12, 0  ;;  %v2144_v14 = vsel %vm1912_vm4, %v1906_v52, 0  ;;  %v2190_v19 = vsel %vm1912_vm4, %v1907_v15, 0  ;;  %v2236_v20 = vsel %vm1912_vm4, %v1908_v16, 0 }
 0x4cf   : > { %3407 = vmatpush3.bf16.msra.mxu0 %v2098_v13  ;;  %3413 = vmatpush3.bf16.msra.mxu1 %v2144_v14 }
 0x4d0   : > { %3418 = vmatprep.subr.bf16.mxu0 %v3611_v48  ;;  %3424 = vmatprep.subr.bf16.mxu1 %v3611_v48 }
 0x4d2   : > { %3409 = vmatmul.mubr.msk.bf16.vlgmr.msra.gmra.mrb[20].mxu0 %vm1820_vm6, %v1897_v17  ;;  %3415 = vmatmul.mubr.msk.bf16.vlgmr.msra.gmra.mrb[32].mxu1 %vm1820_vm6, %v1898_v18 }
 0x4d3   : > { %3419 = vmatpush3.bf16.msra.mxu0 %v2190_v19  ;;  %3425 = vmatpush3.bf16.msra.mxu1 %v2236_v20 }
 0x4d4   : > { %3420 = vmatprep.mubr.msk.bf16.mxu0 %vm3612_vm2, %v3611_v48  ;;  %3426 = vmatprep.mubr.msk.bf16.mxu1 %vm3612_vm2, %v3611_v48 }
 0x4d5   : > { %3430 = vmatprep.subr.bf16.mxu0 %v3611_v48 }
 0x4da   : > { %v1841_v22 = vpop.xlane.xlu1 %1840 }
 0x4db   : > { %v1851_v40 = vsub.f32 %v4026_v7, %v1841_v22 }
 0x4dd   : > { %v1865_v23 = vmul.f32 1.442695, %v1851_v40 }
 0x4df   : > { %3530 = vpow2.f32 %v1865_v23 }
 0x4e9   : > { %v3531_v24 = vpop.eup %3530 }
 0x4ea   : > { %v1844_v25 = vpop.xlane.xlu0 %1843  ;;  %v1887_v53 = vsel %vm1820_vm6, %v3531_v24, 0.0  ;;  %v1899_v26 = vpack.c.bf16 %v3531_v24, %v3531_v24 }
 0x4eb   : > { %v1852_v28 = vsub.f32 %v4020_v56, %v1844_v25  ;;  %1888 = vadd.xlane.f32.xlu0 %v1887_v53  ;;  %v3483_v56 = vld [vmem:[%s3693_s18 + $0x8] sm:$0xff]  }
 0x4ec   : > { %3421 = vmatmul.mubr.msk.bf16.vlgmr.msra.gmra.mrb[24].mxu0 %vm1820_vm6, %v1899_v26 }
 0x4ed   : > { %v1867_v51 = vmul.f32 1.442695, %v1852_v28  ;;  %3438 = vmatprep.mubr.msk.bf16.mxu0 %vm3612_vm2, %v3611_v48  ;;  %3431 = vmatpush3.bf16.msra.mxu0 %v3482_v37 }
 0x4ee   : > { %3432 = vmatprep.subr.bf16.mxu0 %v3611_v48 }
 0x4ef   : > { %3532 = vpow2.f32 %v1867_v51 }
 0x4f1   : > { %3433 = vmatpush3.bf16.msra.mxu0 %v3483_v56 }
 0x4f2   : > { %3434 = vmatprep.subr.bf16.mxu0 %v3611_v48 }
 0x4f5   : > { %3435 = vmatpush3.bf16.msra.mxu0 %v3484_v29 }
 0x4f6   : > { %3436 = vmatprep.subr.bf16.mxu0 %v3611_v48 }
 0x4f9   : > { %v3533_v7 = vpop.eup %3532 }
 0x4fa   : > { %v1890_v35 = vsel %vm1820_vm6, %v3533_v7, 0.0  ;;  %v1900_v36 = vpack.c.bf16 %v3533_v7, %v3533_v7 }
 0x4fb   : > { %1891 = vadd.xlane.f32.xlu1 %v1890_v35 }
 0x4fc   : > { %3427 = vmatmul.mubr.msk.bf16.vlgmr.msra.gmra.mrb[36].mxu1 %vm1820_vm6, %v1900_v36 }
 0x4fd   : > { %2817 = vmatprep.mubr.bf16.mxu1 %v3606_v21 }
 0x53b   : > { %v1871_v38 = vpop.xlane.xlu0 %1870 }
 0x53c   : > { %3534 = vrcp.f32 %v1871_v38 }
 0x53f   : > { %v1877_v30 = vpop.xlane.xlu0 %1876 }
 0x540   : > { %3536 = vrcp.f32 %v1877_v30 }
 0x543   : > { %v1874_v46 = vpop.xlane.xlu1 %1873 }
 0x544   : > { %3538 = vrcp.f32 %v1874_v46 }
 0x546   : > { %v3535_v49 = vpop.eup %3534 }
 0x54a   : > { %v3537_v55 = vpop.eup %3536 }
 0x54e   : > { %v3539_v45 = vpop.eup %3538 }
 0x54f   : > { %v1880_v50 = vpop.xlane.xlu1 %1879 }
 0x550   : > { %3540 = vrcp.f32 %v1880_v50 }
 0x55a   : > { %v3541_v4 = vpop.eup %3540 }
 0x582   : > { %v1950_v31 = vpop.f32.mrb[12].mxu0 }
 0x583   : > { %v3386_v34 = vpop.f32.mrb[13].mxu0  ;;  %v2286_v42 = vmul.f32 %v3535_v49, %v1950_v31 }
 0x584   : > { %v1953_v39 = vpop.f32.mrb[14].mxu0 }
 0x585   : > { %v3387_v47 = vpop.f32.mrb[15].mxu0  ;;  %v2294_v5 = vpack.c.bf16 %v2286_v42, %v2286_v42 }
 0x587   : > { %v2301_v62 = vrot.slane %v2294_v5, %v3780_v63 }
 0x58a   : > { %v1996_v57 = vpop.f32.mrb[24].mxu1  ;;  %v2042_v27 = vpop.f32.mrb[16].mxu0 }
 0x58b   : > { %v2288_v8 = vmul.f32 %v3537_v55, %v2042_v27  ;;  %v3392_v9 = vpop.f32.mrb[25].mxu1  ;;  %v3398_v32 = vpop.f32.mrb[17].mxu0  ;;  %v2287_v3 = vmul.f32 %v3539_v45, %v1996_v57 }
 0x58c   : > { %v1999_v48 = vpop.f32.mrb[26].mxu1  ;;  %v2045_v33 = vpop.f32.mrb[18].mxu0 }
 0x58d   : > { %v2302_v58 = vpack.c.bf16 %v2288_v8, %v2288_v8  ;;  %v3393_v60 = vpop.f32.mrb[27].mxu1  ;;  %v3399_v61 = vpop.f32.mrb[19].mxu0  ;;  %v2328_v11 = vpack.c.bf16 %v2287_v3, %v2287_v3 }
 0x58e   : > { %v1883_v61 = vpop.xlane.xlu0 %1882 }
 0x58f   : > { %v2309_v41 = vrot.slane %v2302_v58, %v3780_v63  ;;  %v2335_v52 = vrot.slane %v2328_v11, %v3780_v63  ;;  %3542 = vrcp.f32 %v1883_v61 }
 0x591   : > { %v2310_v43 = vcombine.low %v2301_v62, %v2309_v41  ;;  %v2311_v44 = vcombine.high %v2301_v62, %v2309_v41 }
 0x592   : > { %v1889_v62 = vpop.xlane.xlu0 %1888 }
 0x593   : > { %v2318_v12 = vrot.slane %v2310_v43, %v3783_v6  ;;  %v2325_v14 = vrot.slane %v2311_v44, %v3783_v6  ;;  %3544 = vrcp.f32 %v1889_v62  ;;  %v1886_v44 = vpop.xlane.xlu1 %1885 }
 0x594   : > { %3546 = vrcp.f32 %v1886_v44 }
 0x595   : > { %v2326_v17 = vcombine.high %v2318_v12, %v3606_v21  ;;  %v2327_v20 = vcombine.high %v2325_v14, %v3606_v21  ;;  %v2434_v22 = vshrl.u32 %v2318_v12, 16  ;;  %v2450_v26 = vshrl.u32 %v2325_v14, 16 }
 0x596   : > { %v2088_v10 = vpop.f32.mrb[28].mxu1 }
 0x597   : > { %v2289_v1 = vmul.f32 %v3541_v4, %v2088_v10  ;;  %v3404_v54 = vpop.f32.mrb[29].mxu1  ;;  %v2442_v53 = vshrl.u32 %v2326_v17, 16  ;;  %v2458_v56 = vshrl.u32 %v2327_v20, 16 }
 0x598   : > { %v2091_v2 = vpop.f32.mrb[30].mxu1  ;;  %v1892_v54 = vpop.xlane.xlu1 %1891 }
 0x599   : > { %v2336_v0 = vpack.c.bf16 %v2289_v1, %v2289_v1  ;;  %v3405_v59 = vpop.f32.mrb[31].mxu1  ;;  %v3543_v41 = vpop.eup %3542  ;;  %3548 = vrcp.f32 %v1892_v54 }
 0x59b   : > { %v2343_v13 = vrot.slane %v2336_v0, %v3780_v63 }
 0x59d   : > { %v2344_v15 = vcombine.low %v2335_v52, %v2343_v13  ;;  %v2345_v16 = vcombine.high %v2335_v52, %v2343_v13  ;;  %v3545_v45 = vpop.eup %3544 }
 0x59f   : > { %v2352_v18 = vrot.slane %v2344_v15, %v3783_v6  ;;  %v2359_v19 = vrot.slane %v2345_v16, %v3783_v6 }
 0x5a1   : > { %v2360_v40 = vcombine.high %v2352_v18, %v3606_v21  ;;  %v2361_v23 = vcombine.high %v2359_v19, %v3606_v21  ;;  %v2432_v24 = vpack.i.b16 %v2352_v18, %v2318_v12  ;;  %v2435_v25 = vshrl.u32 %v2352_v18, 16 }
 0x5a2   : > { %v2448_v28 = vpack.i.b16 %v2359_v19, %v2325_v14  ;;  %v2451_v51 = vshrl.u32 %v2359_v19, 16  ;;  %v3547_v14 = vpop.eup %3546 }
 0x5a3   : > { %v2436_v7 = vpack.i.b16 %v2435_v25, %v2434_v22  ;;  %v2440_v35 = vpack.i.b16 %v2360_v40, %v2326_v17  ;;  %v2443_v36 = vshrl.u32 %v2360_v40, 16  ;;  %v2456_v37 = vpack.i.b16 %v2361_v23, %v2327_v20  ;;  %v3549_v16 = vpop.eup %3548 }
 0x5a4   : > { %v2452_v38 = vpack.i.b16 %v2451_v51, %v2450_v26  ;;  %v2459_v29 = vshrl.u32 %v2361_v23, 16  ;;  %v2494_v30 = vcombine.low %v2432_v24, %v2448_v28 }
 0x5a5   : > { %v2444_v31 = vpack.i.b16 %v2443_v36, %v2442_v53  ;;  %v2134_v34 = vpop.f32.mrb[20].mxu0  ;;  %v2180_v39 = vpop.f32.mrb[32].mxu1  ;;  %v2502_v46 = vcombine.low %v2440_v35, %v2456_v37 }
 0x5a6   : > { %v2460_v47 = vpack.i.b16 %v2459_v29, %v2458_v56  ;;  %v3410_v49 = vpop.f32.mrb[21].mxu0  ;;  %v3416_v42 = vpop.f32.mrb[33].mxu1  ;;  %v2501_v57 = vrot.slane %v2494_v30, %v3780_v63  ;;  %v2544_v5 = vcombine.low %v2436_v7, %v2452_v38  ;;  %v2290_v43 = vmul.f32 %v3543_v41, %v2134_v34 }
 0x5a7   : > { %v2137_v50 = vpop.f32.mrb[22].mxu0  ;;  %v2183_v55 = vpop.f32.mrb[34].mxu1  ;;  %v2509_v27 = vrot.slane %v2502_v46, %v3780_v63  ;;  %v2291_v15 = vmul.f32 %v3547_v14, %v2180_v39 }
 0x5a8   : > { %v3411_v8 = vpop.f32.mrb[23].mxu0  ;;  %v3417_v9 = vpop.f32.mrb[35].mxu1  ;;  %v2552_v32 = vcombine.low %v2444_v31, %v2460_v47  ;;  %v4123_v33 = vrot.slane %v2544_v5, %v3780_v63  ;;  %v2362_v4 = vpack.c.bf16 %v2290_v43, %v2290_v43 }
 0x5a9   : > { %v4120_v48 = vcombine.low %v2501_v57, %v2509_v27  ;;  %v2396_v18 = vpack.c.bf16 %v2291_v15, %v2291_v15 }
 0x5aa   : > { %v4126_v58 = vrot.slane %v2552_v32, %v3780_v63  ;;  %v2369_v59 = vrot.slane %v2362_v4, %v3780_v63 }
 0x5ab   : > { %v2403_v25 = vrot.slane %v2396_v18, %v3780_v63 }
 0x5ac   : > { %v2576_v60 = vcombine.low %v4123_v33, %v4126_v58 }
 0x5bf   : > { %v2226_v3 = vpop.f32.mrb[24].mxu0 }
 0x5c0   : > { %v2292_v10 = vmul.f32 %v3545_v45, %v2226_v3  ;;  %v3422_v11 = vpop.f32.mrb[25].mxu0  ;;  %v3485_v45 = vld [vmem:[%s3693_s18 + $0x18] sm:$0xff]   ;;  %s3615_s18 = smov 32  }
 0x5c1   : > { %v2229_v1 = vpop.f32.mrb[26].mxu0  ;;  %3437 = vmatpush3.bf16.msra.mxu0 %v3485_v45 }
 0x5c2   : > { %v2370_v2 = vpack.c.bf16 %v2292_v10, %v2292_v10  ;;  %v3423_v0 = vpop.f32.mrb[27].mxu0  ;;  %v2533_v10 = vrot.slane %v4120_v48, %v3783_v6 }
 0x5c3   : > { %v2583_v0 = vrot.slane %v2576_v60, %v3783_v6 }
 0x5c4   : > { %v2377_v12 = vrot.slane %v2370_v2, %v3780_v63 }
 0x5c6   : > { %v2378_v52 = vcombine.low %v2369_v59, %v2377_v12  ;;  %v2379_v13 = vcombine.high %v2369_v59, %v2377_v12 }
 0x5c8   : > { %v2386_v24 = vrot.slane %v2378_v52, %v3783_v6  ;;  %v2393_v26 = vrot.slane %v2379_v13, %v3783_v6 }
 0x5ca   : > { %v2394_v7 = vcombine.high %v2386_v24, %v3606_v21  ;;  %v2395_v37 = vcombine.high %v2393_v26, %v3606_v21  ;;  %v2466_v56 = vshrl.u32 %v2386_v24, 16  ;;  %v2482_v39 = vshrl.u32 %v2393_v26, 16 }
 0x5cc   : > { %v2474_v34 = vshrl.u32 %v2394_v7, 16  ;;  %v2490_v57 = vshrl.u32 %v2395_v37, 16 }
 0x5cf   : > { %v2272_v17 = vpop.f32.mrb[36].mxu1 }
 0x5d0   : > { %v2293_v19 = vmul.f32 %v3549_v16, %v2272_v17  ;;  %v3428_v20 = vpop.f32.mrb[37].mxu1 }
 0x5d1   : > { %v2275_v22 = vpop.f32.mrb[38].mxu1 }
 0x5d2   : > { %v2404_v40 = vpack.c.bf16 %v2293_v19, %v2293_v19  ;;  %v3429_v23 = vpop.f32.mrb[39].mxu1 }
 0x5d4   : > { %v2411_v53 = vrot.slane %v2404_v40, %v3780_v63  ;;  %v3562_v40 = vld [vmem:[#allocation2] sm:$0xff] }
 0x5d6   : > { %v2412_v28 = vcombine.low %v2403_v25, %v2411_v53  ;;  %v2413_v51 = vcombine.high %v2403_v25, %v2411_v53  ;;  %v3563_v53 = vld [vmem:[#allocation2 + $0x8] sm:$0xff] }
 0x5d8   : > { %v2420_v35 = vrot.slane %v2412_v28, %v3783_v6  ;;  %v2427_v36 = vrot.slane %v2413_v51, %v3783_v6 }
 0x5da   : > { %v2428_v38 = vcombine.high %v2420_v35, %v3606_v21  ;;  %v2429_v29 = vcombine.high %v2427_v36, %v3606_v21  ;;  %v2464_v30 = vpack.i.b16 %v2420_v35, %v2386_v24  ;;  %v2467_v31 = vshrl.u32 %v2420_v35, 16 }
 0x5db   : > { %v2480_v46 = vpack.i.b16 %v2427_v36, %v2393_v26  ;;  %v2483_v47 = vshrl.u32 %v2427_v36, 16 }
 0x5dc   : > { %v2468_v49 = vpack.i.b16 %v2467_v31, %v2466_v56  ;;  %v2472_v42 = vpack.i.b16 %v2428_v38, %v2394_v7  ;;  %v2475_v50 = vshrl.u32 %v2428_v38, 16  ;;  %v2488_v55 = vpack.i.b16 %v2429_v29, %v2395_v37 }
 0x5dd   : > { %v2484_v27 = vpack.i.b16 %v2483_v47, %v2482_v39  ;;  %v2491_v5 = vshrl.u32 %v2429_v29, 16  ;;  %v2510_v8 = vcombine.low %v2464_v30, %v2480_v46  ;;  %v3488_v46 = vld [vmem:[%s3702_s24 + $0x4] ss:$8 sps:$4 sm:$0xff]   ;;  %v3486_v47 = vld [vmem:[%s3702_s24] ss:$8 sps:$4 sm:$0xff]  }
 0x5de   : > { %v2476_v9 = vpack.i.b16 %v2475_v50, %v2474_v34  ;;  %v2518_v32 = vcombine.low %v2472_v42, %v2488_v55  ;;  %2785 = vmatprep.subr.bf16.mxu1 %v3488_v46  ;;  %v3491_v42 = vld [vmem:[%s3702_s24 + $0x14] ss:$8 sps:$4 sm:$0xff]   ;;  %v3494_v50 = vld [vmem:[%s3702_s24 + $0x24] ss:$8 sps:$4 sm:$0xff]   ;;  %v3492_v55 = vld [vmem:[%s3702_s24 + $0x20] ss:$8 sps:$4 sm:$0xff]  }
 0x5df   : > { %v2492_v61 = vpack.i.b16 %v2491_v5, %v2490_v57  ;;  %v2560_v62 = vcombine.low %v2468_v49, %v2484_v27  ;;  %v2517_v21 = vrot.slane %v2510_v8, %v3780_v63  ;;  %2786 = vmatpush1.bf16.msra.mxu1 %v3486_v47  ;;  %v3489_v49 = vld [vmem:[%s3702_s24 + $0x10] ss:$8 sps:$4 sm:$0xff]   ;;  %v3497_v57 = vld [vmem:[%s3702_s24 + $0x34] ss:$8 sps:$4 sm:$0xff]  }
 0x5e0   : > { %v2525_v41 = vrot.slane %v2518_v32, %v3780_v63  ;;  %2787 = vmatprep.subr.bf16.mxu1 %v3491_v42  ;;  %v3495_v27 = vld [vmem:[%s3702_s24 + $0x30] ss:$8 sps:$4 sm:$0xff]  }
 0x5e1   : > { %v2568_v43 = vcombine.low %v2476_v9, %v2492_v61  ;;  %v2567_v3 = vrot.slane %v2560_v62, %v3780_v63 }
 0x5e2   : > { %v2534_v44 = vcombine.low %v2517_v21, %v2525_v41 }
 0x5e3   : > { %v2575_v4 = vrot.slane %v2568_v43, %v3780_v63  ;;  %2788 = vmatpush1.bf16.msra.mxu1 %v3489_v49 }
 0x5e4   : > { %v2541_v11 = vrot.slane %v2534_v44, %v3783_v6  ;;  %2789 = vmatprep.subr.bf16.mxu1 %v3494_v50  ;;  %v3239_v44 = vld [vmem:[%s369_s21] ss:$0 sm:$0xff] }
 0x5e5   : > { %v2584_v1 = vcombine.low %v2567_v3, %v2575_v4 }
 0x5e6   : > { %v2543_v54 = vcombine.high %v2533_v10, %v2541_v11  ;;  %v2542_v2 = vcombine.low %v2533_v10, %v2541_v11  ;;  %v3498_v11 = vld [vmem:[%s3708_s9 + $0x40] sm:$0xff]  }
 0x5e7   : > { %v2591_v59 = vrot.slane %v2584_v1, %v3783_v6  ;;  %2790 = vmatpush1.bf16.msra.mxu1 %v3492_v55  ;;  %v3499_v1 = vld [vmem:[%s3708_s9] sm:$0xff]   ;;  %3312 = vmatprep.subr.bf16.mxu0 %v3498_v11 }
 0x5e8   : > { %v2597_v13 = vshrl.u32 %v2542_v2, 16  ;;  %v2603_v63 = vshrl.u32 %v2543_v54, 16  ;;  %2791 = vmatprep.subr.bf16.mxu1 %v3497_v57 }
 0x5e9   : > { %v2593_v12 = vcombine.high %v2583_v0, %v2591_v59  ;;  %v2592_v52 = vcombine.low %v2583_v0, %v2591_v59  ;;  %v3502_v0 = vld [vmem:[%s3708_s9 + $0x50] sm:$0xff]  }
 0x5ea   : > { %v3503_v59 = vld [vmem:[%s3708_s9 + $0x10] sm:$0xff]  }
 0x5eb   : > { %v2602_v14 = vpack.i.b16 %v2593_v12, %v2543_v54  ;;  %v2598_v15 = vshrl.u32 %v2592_v52, 16  ;;  %v2604_v48 = vshrl.u32 %v2593_v12, 16  ;;  %v2596_v16 = vpack.i.b16 %v2592_v52, %v2542_v2  ;;  %2792 = vmatpush1.bf16.msra.mxu1 %v3495_v27  ;;  %v3500_v54 = vld [vmem:[%s3708_s9 + $0x48] sm:$0xff]   ;;  %v3504_v12 = vld [vmem:[%s3708_s9 + $0x58] sm:$0xff]  }
 0x5ec   : > { %v3501_v2 = vld [vmem:[%s3708_s9 + $0x8] sm:$0xff]   ;;  %v3505_v52 = vld [vmem:[%s3708_s9 + $0x18] sm:$0xff]  }
 0x5ed   : > { %2608 = vrot.lane.b32.xlu1 %v2602_v14, %s3615_s18  ;;  %v2599_v17 = vpack.i.b16 %v2598_v15, %v2597_v13  ;;  %v2605_v18 = vpack.i.b16 %v2604_v48, %v2603_v63  ;;  %v3506_v13 = vld [vmem:[%s3708_s9 + $0x60] sm:$0xff]   ;;  %v3508_v14 = vld [vmem:[%s3708_s9 + $0x68] sm:$0xff]   ;;  %v3510_v48 = vld [vmem:[%s3708_s9 + $0x70] sm:$0xff]  }
 0x5ee   : > { %v3507_v63 = vld [vmem:[%s3708_s9 + $0x20] sm:$0xff]   ;;  %v3509_v15 = vld [vmem:[%s3708_s9 + $0x28] sm:$0xff]  }
 0x5ef   : > { %2606 = vrot.lane.b32.xlu0 %v2599_v17, %s3616_s22  ;;  %v3512_v17 = vld [vmem:[%s3708_s9 + $0x78] sm:$0xff]  }
 0x5f1   : > { %2610 = vrot.lane.b32.xlu1 %v2605_v18, %s3617_s23  ;;  %v3513_v18 = vld [vmem:[%s3708_s9 + $0x38] sm:$0xff]  }
 0x65f   : > { %v2609_v33 = vpop.permute.xlu1 %2608 }
 0x661   : > { %v2607_v6 = vpop.permute.xlu0 %2606 }
 0x662   : > { %v2614_v58 = vsel %vm1436_vm3, %v2596_v16, %v2607_v6  ;;  %v3511_v16 = vld [vmem:[%s3708_s9 + $0x30] sm:$0xff]  }
 0x663   : > { %v2611_v60 = vpop.permute.xlu1 %2610  ;;  %v2617_v19 = vsel %vm2615_vm7, %v2614_v58, %v2609_v33 }
 0x664   : > { %v2620_v20 = vsel %vm2618_vm8, %v2617_v19, %v2611_v60 }
 0x665   : > { %3439 = vmatmul.mubr.msk.bf16.vlgmr.msra.gmra.mrb[28].mxu0 %vm393_vm1, %v2620_v20 }
 0x666   : > { %3313 = vmatpush3.bf16.msra.mxu0 %v3499_v1 }
 0x667   : > { %3314 = vmatprep.subr.bf16.mxu0 %v3500_v54 }
 0x66a   : > { %3315 = vmatpush3.bf16.msra.mxu0 %v3501_v2 }
 0x66b   : > { %3316 = vmatprep.subr.bf16.mxu0 %v3502_v0 }
 0x66e   : > { %3317 = vmatpush3.bf16.msra.mxu0 %v3503_v59 }
 0x66f   : > { %3318 = vmatprep.subr.bf16.mxu0 %v3504_v12 }
 0x672   : > { %3319 = vmatpush3.bf16.msra.mxu0 %v3505_v52 }
 0x673   : > { %3320 = vmatprep.subr.bf16.mxu0 %v3506_v13 }
 0x676   : > { %3321 = vmatpush3.bf16.msra.mxu0 %v3507_v63 }
 0x677   : > { %3322 = vmatprep.subr.bf16.mxu0 %v3508_v14 }
 0x67a   : > { %3323 = vmatpush3.bf16.msra.mxu0 %v3509_v15 }
 0x67b   : > { %3324 = vmatprep.subr.bf16.mxu0 %v3510_v48 }
 0x67e   : > { %3325 = vmatpush3.bf16.msra.mxu0 %v3511_v16 }
 0x67f   : > { %3326 = vmatprep.subr.bf16.mxu0 %v3512_v17 }
 0x682   : > { %3327 = vmatpush3.bf16.msra.mxu0 %v3513_v18 }
 0x738   : > { %v2689_v22 = vpop.f32.mrb[28].mxu0 }
 0x739   : > { %v4158_v23 = vadd.f32 %v3562_v40, %v2689_v22  ;;  %v3440_v24 = vpop.f32.mrb[29].mxu0 }
 0x73a   : > { %v2692_v25 = vpop.f32.mrb[30].mxu0 }
 0x73b   : > { %v4160_v26 = vadd.f32 %v3563_v53, %v2692_v25  ;;  %v3441_v28 = vpop.f32.mrb[31].mxu0  ;;  %v2699_v51 = vsel %vm393_vm1, %v4158_v23, 0.0 }
 0x73c   : > { %2700 = vadd.xlane.f32.xlu1 %v2699_v51 }
 0x73d   : > { %v2702_v7 = vsel %vm393_vm1, %v4160_v26, 0.0 }
 0x73e   : > { %2703 = vadd.xlane.f32.xlu0 %v2702_v7 }
 0x7c9   : > { %v2701_v35 = vpop.xlane.xlu1 %2700 }
 0x7ca   : > { %v2705_v36 = vmul.f32 0.015625, %v2701_v35 }
 0x7cb   : > { %v2704_v37 = vpop.xlane.xlu0 %2703 }
 0x7cc   : > { %v2707_v56 = vsub.f32 %v4158_v23, %v2705_v36  ;;  %v2706_v38 = vmul.f32 0.015625, %v2704_v37 }
 0x7ce   : > { %v2708_v29 = vsub.f32 %v4160_v26, %v2706_v38  ;;  %v2709_v30 = vmul.f32 %v2707_v56, %v2707_v56 }
 0x7d0   : > { %v2711_v31 = vsel %vm393_vm1, %v2709_v30, 0.0  ;;  %v2710_v34 = vmul.f32 %v2708_v29, %v2708_v29 }
 0x7d1   : > { %2712 = vadd.xlane.f32.xlu0 %v2711_v31 }
 0x7d2   : > { %v2714_v39 = vsel %vm393_vm1, %v2710_v34, 0.0 }
 0x7d5   : > { %2715 = vadd.xlane.f32.xlu0 %v2714_v39 }
 0x85e   : > { %v2713_v5 = vpop.xlane.xlu0 %2712 }
 0x85f   : > { %v2717_v8 = vmul.f32 0.015625, %v2713_v5 }
 0x861   : > { %v2719_v9 = vadd.f32 1e-05, %v2717_v8 }
 0x862   : > { %v2716_v32 = vpop.xlane.xlu0 %2715 }
 0x863   : > { %3550 = vrsqrt.f32 %v2719_v9  ;;  %v2718_v61 = vmul.f32 0.015625, %v2716_v32 }
 0x865   : > { %v2720_v62 = vadd.f32 1e-05, %v2718_v61 }
 0x867   : > { %3552 = vrsqrt.f32 %v2720_v62 }
 0x86d   : > { %v3551_v21 = vpop.eup %3550 }
 0x86e   : > { %v2723_v41 = vmul.f32 %v3551_v21, %v2707_v56 }
 0x870   : > { %v2731_v4 = vmul.f32 %v3239_v44, %v2723_v41 }
 0x871   : > { %v3553_v43 = vpop.eup %3552 }
 0x872   : > { %v2724_v45 = vmul.f32 %v3553_v43, %v2708_v29 }
 0x874   : > { %v2732_v3 = vmul.f32 %v3239_v44, %v2724_v45 }
 0x876   : > { %v2733_v10 = vpack.c.bf16 %v2732_v3, %v2731_v4 }
 0x878   : > { %3248 = vmatmul.mubr.msk.bf16.vlgmr.msra.gmra.mrb[40].mxu1 %vm393_vm1, %v2733_v10 }
 0x94b   : > { %v2819_v33 = vpop.f32.mrb[40].mxu1 }
 0x94c   : > { %v2832_v6 = vmul.f32 0.044715, %v2819_v33  ;;  %v2821_v58 = vpop.f32.mrb[41].mxu1  ;;  %v2828_v57 = vmul.f32 0.5, %v2819_v33 }
 0x94d   : > { %v2833_v60 = vmul.f32 0.044715, %v2821_v58  ;;  %v2823_v19 = vpop.f32.mrb[42].mxu1  ;;  %v2829_v9 = vmul.f32 0.5, %v2821_v58 }
 0x94e   : > { %v2836_v20 = vmul.f32 %v2832_v6, %v2819_v33  ;;  %v2834_v22 = vmul.f32 0.044715, %v2823_v19  ;;  %v2825_v40 = vpop.f32.mrb[43].mxu1  ;;  %v2830_v27 = vmul.f32 0.5, %v2823_v19 }
 0x94f   : > { %v2837_v24 = vmul.f32 %v2833_v60, %v2821_v58  ;;  %v2835_v25 = vmul.f32 0.044715, %v2825_v40  ;;  %v2831_v8 = vmul.f32 0.5, %v2825_v40 }
 0x950   : > { %v2840_v53 = vmul.f32 %v2836_v20, %v2819_v33  ;;  %v2838_v28 = vmul.f32 %v2834_v22, %v2823_v19  ;;  %v3266_v20 = vld [vmem:[%s4249_s7] ss:$0 sm:$0xff] (!%p3265_p5) }
 0x951   : > { %v2841_v51 = vmul.f32 %v2837_v24, %v2821_v58  ;;  %v2839_v7 = vmul.f32 %v2835_v25, %v2825_v40 }
 0x952   : > { %v2844_v35 = vadd.f32 %v2840_v53, %v2819_v33  ;;  %v2842_v36 = vmul.f32 %v2838_v28, %v2823_v19 }
 0x953   : > { %v2845_v37 = vadd.f32 %v2841_v51, %v2821_v58  ;;  %v2843_v56 = vmul.f32 %v2839_v7, %v2825_v40 }
 0x954   : > { %v2848_v38 = vmul.f32 0.7978846, %v2844_v35  ;;  %v2846_v29 = vadd.f32 %v2842_v36, %v2823_v19 }
 0x955   : > { %v2849_v30 = vmul.f32 0.7978846, %v2845_v37  ;;  %v2847_v31 = vadd.f32 %v2843_v56, %v2825_v40 }
 0x956   : > { %3554 = vtanh.f32 %v2848_v38  ;;  %v2850_v34 = vmul.f32 0.7978846, %v2846_v29 }
 0x957   : > { %3556 = vtanh.f32 %v2849_v30  ;;  %v2851_v39 = vmul.f32 0.7978846, %v2847_v31 }
 0x958   : > { %3558 = vtanh.f32 %v2850_v34 }
 0x959   : > { %3560 = vtanh.f32 %v2851_v39 }
 0x960   : > { %v3555_v46 = vpop.eup %3554 }
 0x961   : > { %v3557_v47 = vpop.eup %3556  ;;  %v2856_v49 = vadd.f32 1.0, %v3555_v46 }
 0x962   : > { %v3559_v42 = vpop.eup %3558  ;;  %v2857_v50 = vadd.f32 1.0, %v3557_v47 }
 0x963   : > { %v3561_v55 = vpop.eup %3560  ;;  %v2858_v5 = vadd.f32 1.0, %v3559_v42  ;;  %v2860_v61 = vmul.f32 %v2856_v49, %v2828_v57 }
 0x964   : > { %v2859_v32 = vadd.f32 1.0, %v3561_v55  ;;  %v2861_v21 = vmul.f32 %v2857_v50, %v2829_v9 }
 0x965   : > { %v2862_v62 = vmul.f32 %v2858_v5, %v2830_v27 }
 0x966   : > { %v2863_v41 = vmul.f32 %v2859_v32, %v2831_v8 }
 0x967   : > { %v2864_v43 = vpack.c.bf16 %v2862_v62, %v2860_v61 }
 0x968   : > { %v2865_v44 = vpack.c.bf16 %v2863_v41, %v2861_v21 }
 0x96a   : > { %3026 = vmatprep.mubr.bf16.mxu0 %v2865_v44 }
 0x96b   : > { %3027 = vmatmul.mubr.bf16.vlgmr.msra.gmra.mrb[32].mxu0 %v2864_v43 }
 0xa3e   : > { %v3328_v45 = vpop.f32.mrb[32].mxu0 }
 0xa3f   : > { %v3329_v3 = vpop.f32.mrb[33].mxu0 }
 0xa40   : > { %v3330_v4 = vadd.f32 %v3329_v3, %v3328_v45  ;;  %v3331_v10 = vpop.f32.mrb[34].mxu0  ;;  %3042 = sbr.rel (%p3265_p5) target bundleno = 2944 (0xb80), region = 60 }
 0xa41   : > { %v3332_v11 = vpop.f32.mrb[35].mxu0 }
 0xa42   : > { %v3035_v1 = vadd.f32 %v3330_v4, %v4158_v23  ;;  %v3333_v54 = vadd.f32 %v3332_v11, %v3331_v10 }
 0xa44   : > { %3037 = vst.msk [vmem:[#allocation2] sm:$0xff] %vm393_vm1, %v3035_v1  ;;  %v3036_v2 = vadd.f32 %v3333_v54, %v4160_v26  ;;  %v3045_v0 = vsel (!%p3265_p5), %vm3044_vm9, %v3035_v1, 0.0 }
 0xa45   : > { %3046 = vadd.xlane.f32.xlu0 (!%p3265_p5), %v3045_v0 }
 0xa46   : > { %3038 = vst.msk [vmem:[#allocation2 + $0x8] sm:$0xff] %vm393_vm1, %v3036_v2  ;;  %v3048_v59 = vsel (!%p3265_p5), %vm3044_vm9, %v3036_v2, 0.0 }
 0xa49   : > { %3049 = vadd.xlane.f32.xlu0 %v3048_v59 }
 0xad2   : > { %v3047_v12 = vpop.xlane.xlu0 %3046 }
 0xad3   : > { %v3051_v52 = vmul.f32 0.015625, %v3047_v12 }
 0xad5   : > { %v3053_v23 = vsub.f32 %v3035_v1, %v3051_v52 }
 0xad6   : > { %v3050_v13 = vpop.xlane.xlu0 %3049 }
 0xad7   : > { %v3052_v63 = vmul.f32 0.015625, %v3050_v13  ;;  %v3055_v14 = vmul.f32 %v3053_v23, %v3053_v23 }
 0xad9   : > { %v3054_v15 = vsub.f32 %v3036_v2, %v3052_v63  ;;  %v3057_v26 = vsel %vm3044_vm9, %v3055_v14, 0.0 }
 0xada   : > { %3058 = vadd.xlane.f32.xlu1 %v3057_v26 }
 0xadb   : > { %v3056_v48 = vmul.f32 %v3054_v15, %v3054_v15 }
 0xadd   : > { %v3060_v16 = vsel %vm3044_vm9, %v3056_v48, 0.0 }
 0xade   : > { %3061 = vadd.xlane.f32.xlu1 %v3060_v16 }
 0xb67   : > { %v3059_v17 = vpop.xlane.xlu1 %3058 }
 0xb68   : > { %v3063_v18 = vmul.f32 0.015625, %v3059_v17 }
 0xb6a   : > { %v3065_v33 = vadd.f32 1e-05, %v3063_v18 }
 0xb6b   : > { %v3062_v6 = vpop.xlane.xlu1 %3061 }
 0xb6c   : > { %3564 = vrsqrt.f32 %v3065_v33  ;;  %v3064_v58 = vmul.f32 0.015625, %v3062_v6 }
 0xb6e   : > { %v3066_v60 = vadd.f32 1e-05, %v3064_v58 }
 0xb70   : > { %3566 = vrsqrt.f32 %v3066_v60 }
 0xb76   : > { %v3565_v19 = vpop.eup %3564 }
 0xb77   : > { %v3069_v22 = vmul.f32 %v3565_v19, %v3053_v23 }
 0xb79   : > { %v3077_v40 = vmul.f32 %v3266_v20, %v3069_v22 }
 0xb7a   : > { %v3567_v24 = vpop.eup %3566 }
 0xb7b   : > { %3079 = vst.msk [vmem:[#allocation3 - $0x7] sm:$0x80] %vm3044_vm9, %v3077_v40  ;;  %v3070_v25 = vmul.f32 %v3567_v24, %v3054_v15 }
 0xb7d   : > { %v3078_v53 = vmul.f32 %v3266_v20, %v3070_v25 }
 0xb7f   : > { %3080 = vst.msk [vmem:[#allocation3 - $0x6] sm:$0x80] %vm3044_vm9, %v3078_v53 }
 0xb80 PF: > { %p3446_p6 = scmp.eq.s32.totalorder %s3671_s28, 3  ;;  %s3618_s26 = smov [#allocation3]  }
 0xb81   : > { %s3087_s30 = sshll.u32 %s3618_s26, 4  ;;  %s3088_s30 = int_to_ptr.vmem [resolvable:$true] %s3087_s30 }
 0xb82   : > { %s3568_s9 = scalar_lea.vmem %s3088_s30, 32  ;;  %p3575_p10 = scmp.lt.s32.totalorder %s3088_s30, %s3088_s30 }
 0xb83   : > { %p3569_p7 = scmp.ne.s32.totalorder %s3088_s30, %s3568_s9  ;;  %p3576_p11 = scmp.lt.s32.totalorder %s3568_s9, %s3568_s9 }
 0xb85   : > { %p3570_p8 = pnand %p3569_p7, %p3446_p6  ;;  %p3577_p12 = por %p3576_p11, %p3575_p10 }
 0xb87   : > { %p3571_p9 = pneg %p3570_p8 }
 0xb89   : > { %p3578_p13 = pnand %p3577_p12, %p3571_p9 }
 0xb8b   : > { %3581 = shalt.err (!%p3578_p13)
}
 0xb8c   : > { %s3582_s15 = scalar_lea.hbm %s4250_s8, 32 }
 0xb8d   : > { %p3583_p0 = scmp.ne.s32.totalorder %s4250_s8, %s3582_s15  ;;  %p3588_p3 = scmp.lt.u32.totalorder %s3582_s15, %s4250_s8 }
 0xb8f   : > { %p3584_p1 = pnand %p3583_p0, %p3446_p6 }
 0xb91   : > { %p3585_p2 = pneg %p3584_p1 }
 0xb93   : > { %p3590_p4 = pnand %p3588_p3, %p3585_p2 }
 0xb95   : > { %3593 = shalt.err (!%p3590_p4)
}
 0xb96   : > { %s3619_s19 = smov 1  }
 0xb97   : > { %3443 = dma.vmem_to_hbm [thread:$0]  (%p3446_p6), %s3088_s30, 32, %s4250_s8, [#allocation4], %s3616_s22, %s3616_s22, %s3619_s19  }
 0xb98   : > { %3599 = dma.done.wait (%p3446_p6), [#allocation4], 32  }
 0xb99   : > { %3601 = vsyncadd (%p3446_p6), [#allocation4], 4294967264 }
 0xb9a PF: > { %s19_s27 = sadd.s32 1, %s3604_s27  }
 0xb9b   : > { %p16_p5 = scmp.ge.s32.totalorder %s19_s27, 6  }
 0xb9d   :  { %18 = sbr.rel (!%p16_p5) target bundleno = 1 (0x1), region = 102 }
 0xba4   :  { %3103 = vsyncpa [#allocation4], 1 }
 0xba5   :  { %3105 = vsyncpa [#allocation4 + $0x1], 1 }

</bundles_post_ra>
